<compile_context>
chip_gen: v5e
topology: v5e:2x2
jax: 0.10.0
libtpu: 0.0.40
codegen_flags: <defaults>
</compile_context>

<pallas_src>
import jax
import jax.numpy as jnp
import numpy as np
from jax import lax
from jax.experimental import pallas as pl
from jax.experimental.pallas import tpu as pltpu

_LANE = 128


def _pad_gates_last(w, H, Hp):
    """Zero-pad the last dim from 4*H to 4*Hp, per-gate (i, f, g, o blocks)."""
    if Hp == H:
        return w
    parts = jnp.split(w, 4, axis=-1)
    pad = [(0, 0)] * (w.ndim - 1) + [(0, Hp - H)]
    return jnp.concatenate([jnp.pad(p, pad) for p in parts], axis=-1)


def _lstm_recurrence_kernel(gx_ref, whh_ref, h_out_ref):
    """Serial LSTM recurrence over T steps, fully VMEM-resident.

    gx_ref : [T, B, 4*Hp] f32 -- precomputed x@W_ih^T + (b_ih + b_hh), padded
    whh_ref: [Hp, 4*Hp]       -- recurrent weight, pre-transposed & padded
    h_out  : [B, Hp]      f32 -- hidden state after the last timestep
    """
    T, B, G = gx_ref.shape
    Hp = G // 4
    w_dtype = whh_ref.dtype

    def step(t, carry):
        h, c = carry
        # Only the unavoidable recurrent matmul stays in the serial loop.
        gates = gx_ref[t] + jnp.dot(h.astype(w_dtype), whh_ref[...],
                                    preferred_element_type=jnp.float32)
        # PyTorch gate order: i, f, g, o.  Hp % 128 == 0 -> lane-aligned slices.
        i = jax.nn.sigmoid(gates[:, 0 * Hp:1 * Hp])
        f = jax.nn.sigmoid(gates[:, 1 * Hp:2 * Hp])
        g = jnp.tanh(gates[:, 2 * Hp:3 * Hp])
        o = jax.nn.sigmoid(gates[:, 3 * Hp:4 * Hp])
        c_new = f * c + i * g
        h_new = o * jnp.tanh(c_new)
        return h_new, c_new

    h0 = jnp.zeros((B, Hp), jnp.float32)
    c0 = jnp.zeros((B, Hp), jnp.float32)
    # Short fixed trip count -> fully unroll so the LLO scheduler sees it.
    h_last, _ = lax.fori_loop(0, T, step, (h0, c0), unroll=True)
    h_out_ref[...] = h_last.astype(h_out_ref.dtype)


@jax.jit
def sentence_lstm_forward(X, params):
    """X: int32 token ids [B, T].  Returns sigmoid(fc(last LSTM hidden)) [B, O]."""
    emb = params["embedding"]          # [V, E]
    w_ih_t = params["w_ih_t"]          # [E, 4H]   (pre-transposed)
    w_hh_t = params["w_hh_t"]          # [H, 4H]   (pre-transposed; may be bf16)
    bias = params["b_ih"] + params["b_hh"]   # [1, 4H]  pre-summed once
    w_fc_t = params["w_fc_t"]          # [H, O]
    b_fc = params["b_fc"]              # [1, O]

    B, T = X.shape
    H = w_hh_t.shape[0]
    Hp = ((H + _LANE - 1) // _LANE) * _LANE   # lane-aligned per-gate width

    # --- glue (XLA): embedding gather + hoisted input projection -------------
    x_emb = emb[X]                                            # [B, T, E]
    gx = jnp.einsum("bte,eg->btg", x_emb, w_ih_t) + bias      # [B, T, 4H]
    gx = jnp.transpose(gx, (1, 0, 2))                         # [T, B, 4H]

    # Pad each gate block H -> Hp with zeros (exactly preserves real outputs).
    gx_p = _pad_gates_last(gx.astype(jnp.float32), H, Hp)     # [T, B, 4*Hp]
    whh_p = _pad_gates_last(w_hh_t, H, Hp)                    # [H, 4*Hp]
    whh_p = jnp.pad(whh_p, ((0, Hp - H), (0, 0)))             # [Hp, 4*Hp]

    # --- Pallas: the serial LSTM recurrence ----------------------------------
    # Single invocation (no grid): gates slab + W_hh are DMA'd into VMEM once.
    # TODO(synk): for large T, chunk the [T, B, 4*Hp] slab with a grid over T
    # (the "arbitrary" axis) once it no longer fits the VMEM budget.
    h_last_p = pl.pallas_call(
        _lstm_recurrence_kernel,
        out_shape=jax.ShapeDtypeStruct((B, Hp), jnp.float32),
        in_specs=[
            pl.BlockSpec(memory_space=pltpu.MemorySpace.VMEM),   # gates slab
            pl.BlockSpec(memory_space=pltpu.MemorySpace.VMEM),   # W_hh^T
        ],
        out_specs=pl.BlockSpec(memory_space=pltpu.MemorySpace.VMEM),
        compiler_params=pltpu.CompilerParams(
            # Above the 16 MiB v5e default, within every generation's physical.
            vmem_limit_bytes=32 * 1024 * 1024,
        ),
    )(gx_p, whh_p)

    # --- glue (XLA): last hidden -> fc -> dropout(eval=identity) -> sigmoid --
    h_last = h_last_p[:, :H]                                  # [B, H]
    logits = h_last @ w_fc_t + b_fc                           # [B, O]
    # TODO(synk): Dropout is eval-mode identity (PyTorch inference semantics);
    # train-mode stochastic masking is not reproduced.
    return jax.nn.sigmoid(logits)


def _reference_forward(X, params):
    """Pure-JAX reference mirroring the PyTorch forward (eval mode)."""
    emb = params["embedding"][X]                     # [B, T, E]
    B, T, E = emb.shape
    H = params["w_hh_t"].shape[0]
    h = jnp.zeros((B, H), jnp.float32)
    c = jnp.zeros((B, H), jnp.float32)
    for t in range(T):
        gates = (emb[:, t, :] @ params["w_ih_t"] + h @ params["w_hh_t"]
                 + params["b_ih"] + params["b_hh"])
        i = jax.nn.sigmoid(gates[:, 0 * H:1 * H])
        f = jax.nn.sigmoid(gates[:, 1 * H:2 * H])
        g = jnp.tanh(gates[:, 2 * H:3 * H])
        o = jax.nn.sigmoid(gates[:, 3 * H:4 * H])
        c = f * c + i * g
        h = o * jnp.tanh(c)
    logits = h @ params["w_fc_t"] + params["b_fc"]
    return jax.nn.sigmoid(logits)


def make_params(key, vocab_size, embed_dim, hidden_dim, output_dim):
    ks = jax.random.split(key, 7)
    scale = 0.1
    return {
        "embedding": scale * jax.random.normal(ks[0], (vocab_size, embed_dim), jnp.float32),
        # Stored pre-transposed: PyTorch keeps W_ih as [4H, E]; we store [E, 4H].
        "w_ih_t": scale * jax.random.normal(ks[1], (embed_dim, 4 * hidden_dim), jnp.float32),
        "w_hh_t": scale * jax.random.normal(ks[2], (hidden_dim, 4 * hidden_dim), jnp.float32),
        "b_ih": scale * jax.random.normal(ks[3], (1, 4 * hidden_dim), jnp.float32),
        "b_hh": scale * jax.random.normal(ks[4], (1, 4 * hidden_dim), jnp.float32),
        "w_fc_t": scale * jax.random.normal(ks[5], (hidden_dim, output_dim), jnp.float32),
        "b_fc": scale * jax.random.normal(ks[6], (1, output_dim), jnp.float32),
    }


if __name__ == "__main__":
    # Small, forward-consistent shapes.
    B, T = 2, 8            # batch, sequence length
    VOCAB, E = 16, 32      # vocab size, embedding dim
    H, O = 32, 4           # LSTM hidden dim, output dim

    key = jax.random.PRNGKey(0)
    kp, kx = jax.random.split(key)
    params = make_params(kp, VOCAB, E, H, O)
    X = jax.random.randint(kx, (B, T), 0, VOCAB, dtype=jnp.int32)

    out = sentence_lstm_forward(X, params)
    out = jax.block_until_ready(out)

    ref = _reference_forward(X, params)
    np.testing.assert_allclose(np.asarray(out), np.asarray(ref), rtol=1e-5, atol=1e-5)

    print("KERNEL_OK")
</pallas_src>

<mosaic_0001>
module attributes {stable_mosaic.version = 11 : i64} {
  func.func @_lstm_recurrence_kernel(%arg0: memref<8x2x512xf32, #tpu.memory_space<vmem>>, %arg1: memref<128x512xf32, #tpu.memory_space<vmem>>, %arg2: memref<2x128xf32, #tpu.memory_space<vmem>>) attributes {dimension_semantics = [], scalar_prefetch = 0 : i64, scratch_operands = 0 : i64, tpu.core_type = #tpu.core_type<tc>} {
    %cst = arith.constant 0.000000e+00 : f32
    %0 = vector.broadcast %cst : f32 to vector<2x128xf32>
    %cst_0 = arith.constant 0.000000e+00 : f32
    %1 = vector.broadcast %cst_0 : f32 to vector<2x128xf32>
    %c0_i32 = arith.constant 0 : i32
    %2 = arith.index_cast %c0_i32 : i32 to index
    %c0 = arith.constant 0 : index
    %c0_1 = arith.constant 0 : index
    %3 = vector.load %arg0[%2, %c0, %c0_1] : memref<8x2x512xf32, #tpu.memory_space<vmem>>, vector<1x2x512xf32>
    %4 = vector.shape_cast %3 : vector<1x2x512xf32> to vector<2x512xf32>
    %c0_2 = arith.constant 0 : index
    %c0_3 = arith.constant 0 : index
    %5 = vector.load %arg1[%c0_2, %c0_3] : memref<128x512xf32, #tpu.memory_space<vmem>>, vector<128x512xf32>
    %cst_4 = arith.constant dense<0.000000e+00> : vector<2x512xf32>
    %6 = tpu.matmul %0, %5, %cst_4 {dimension_numbers = #tpu.dot_dimension_numbers<[1], [0], [0], [1], [0, 0, 1, 1], [], []>} : vector<2x128xf32>, vector<128x512xf32>, vector<2x512xf32> -> vector<2x512xf32>
    %7 = arith.addf %4, %6 : vector<2x512xf32>
    %8 = vector.extract_strided_slice %7 {offsets = [0, 0], sizes = [2, 128], strides = [1, 1]} : vector<2x512xf32> to vector<2x128xf32>
    %9 = arith.negf %8 : vector<2x128xf32>
    %10 = math.exp %9 : vector<2x128xf32>
    %cst_5 = arith.constant 1.000000e+00 : f32
    %11 = vector.broadcast %cst_5 : f32 to vector<2x128xf32>
    %12 = arith.addf %11, %10 : vector<2x128xf32>
    %13 = arith.divf %11, %12 : vector<2x128xf32>
    %14 = vector.extract_strided_slice %7 {offsets = [0, 128], sizes = [2, 128], strides = [1, 1]} : vector<2x512xf32> to vector<2x128xf32>
    %15 = arith.negf %14 : vector<2x128xf32>
    %16 = math.exp %15 : vector<2x128xf32>
    %cst_6 = arith.constant 1.000000e+00 : f32
    %17 = vector.broadcast %cst_6 : f32 to vector<2x128xf32>
    %18 = arith.addf %17, %16 : vector<2x128xf32>
    %19 = arith.divf %17, %18 : vector<2x128xf32>
    %20 = vector.extract_strided_slice %7 {offsets = [0, 256], sizes = [2, 128], strides = [1, 1]} : vector<2x512xf32> to vector<2x128xf32>
    %21 = math.tanh %20 : vector<2x128xf32>
    %22 = vector.extract_strided_slice %7 {offsets = [0, 384], sizes = [2, 128], strides = [1, 1]} : vector<2x512xf32> to vector<2x128xf32>
    %23 = arith.negf %22 : vector<2x128xf32>
    %24 = math.exp %23 : vector<2x128xf32>
    %cst_7 = arith.constant 1.000000e+00 : f32
    %25 = vector.broadcast %cst_7 : f32 to vector<2x128xf32>
    %26 = arith.addf %25, %24 : vector<2x128xf32>
    %27 = arith.divf %25, %26 : vector<2x128xf32>
    %28 = arith.mulf %19, %1 : vector<2x128xf32>
    %29 = arith.mulf %13, %21 : vector<2x128xf32>
    %30 = arith.addf %28, %29 : vector<2x128xf32>
    %31 = math.tanh %30 : vector<2x128xf32>
    %32 = arith.mulf %27, %31 : vector<2x128xf32>
    %c1_i32 = arith.constant 1 : i32
    %33 = arith.index_cast %c1_i32 : i32 to index
    %c0_8 = arith.constant 0 : index
    %c0_9 = arith.constant 0 : index
    %34 = vector.load %arg0[%33, %c0_8, %c0_9] : memref<8x2x512xf32, #tpu.memory_space<vmem>>, vector<1x2x512xf32>
    %35 = vector.shape_cast %34 : vector<1x2x512xf32> to vector<2x512xf32>
    %c0_10 = arith.constant 0 : index
    %c0_11 = arith.constant 0 : index
    %36 = vector.load %arg1[%c0_10, %c0_11] : memref<128x512xf32, #tpu.memory_space<vmem>>, vector<128x512xf32>
    %cst_12 = arith.constant dense<0.000000e+00> : vector<2x512xf32>
    %37 = tpu.matmul %32, %36, %cst_12 {dimension_numbers = #tpu.dot_dimension_numbers<[1], [0], [0], [1], [0, 0, 1, 1], [], []>} : vector<2x128xf32>, vector<128x512xf32>, vector<2x512xf32> -> vector<2x512xf32>
    %38 = arith.addf %35, %37 : vector<2x512xf32>
    %39 = vector.extract_strided_slice %38 {offsets = [0, 0], sizes = [2, 128], strides = [1, 1]} : vector<2x512xf32> to vector<2x128xf32>
    %40 = arith.negf %39 : vector<2x128xf32>
    %41 = math.exp %40 : vector<2x128xf32>
    %cst_13 = arith.constant 1.000000e+00 : f32
    %42 = vector.broadcast %cst_13 : f32 to vector<2x128xf32>
    %43 = arith.addf %42, %41 : vector<2x128xf32>
    %44 = arith.divf %42, %43 : vector<2x128xf32>
    %45 = vector.extract_strided_slice %38 {offsets = [0, 128], sizes = [2, 128], strides = [1, 1]} : vector<2x512xf32> to vector<2x128xf32>
    %46 = arith.negf %45 : vector<2x128xf32>
    %47 = math.exp %46 : vector<2x128xf32>
    %cst_14 = arith.constant 1.000000e+00 : f32
    %48 = vector.broadcast %cst_14 : f32 to vector<2x128xf32>
    %49 = arith.addf %48, %47 : vector<2x128xf32>
    %50 = arith.divf %48, %49 : vector<2x128xf32>
    %51 = vector.extract_strided_slice %38 {offsets = [0, 256], sizes = [2, 128], strides = [1, 1]} : vector<2x512xf32> to vector<2x128xf32>
    %52 = math.tanh %51 : vector<2x128xf32>
    %53 = vector.extract_strided_slice %38 {offsets = [0, 384], sizes = [2, 128], strides = [1, 1]} : vector<2x512xf32> to vector<2x128xf32>
    %54 = arith.negf %53 : vector<2x128xf32>
    %55 = math.exp %54 : vector<2x128xf32>
    %cst_15 = arith.constant 1.000000e+00 : f32
    %56 = vector.broadcast %cst_15 : f32 to vector<2x128xf32>
    %57 = arith.addf %56, %55 : vector<2x128xf32>
    %58 = arith.divf %56, %57 : vector<2x128xf32>
    %59 = arith.mulf %50, %30 : vector<2x128xf32>
    %60 = arith.mulf %44, %52 : vector<2x128xf32>
    %61 = arith.addf %59, %60 : vector<2x128xf32>
    %62 = math.tanh %61 : vector<2x128xf32>
    %63 = arith.mulf %58, %62 : vector<2x128xf32>
    %c2_i32 = arith.constant 2 : i32
    %64 = arith.index_cast %c2_i32 : i32 to index
    %c0_16 = arith.constant 0 : index
    %c0_17 = arith.constant 0 : index
    %65 = vector.load %arg0[%64, %c0_16, %c0_17] : memref<8x2x512xf32, #tpu.memory_space<vmem>>, vector<1x2x512xf32>
    %66 = vector.shape_cast %65 : vector<1x2x512xf32> to vector<2x512xf32>
    %c0_18 = arith.constant 0 : index
    %c0_19 = arith.constant 0 : index
    %67 = vector.load %arg1[%c0_18, %c0_19] : memref<128x512xf32, #tpu.memory_space<vmem>>, vector<128x512xf32>
    %cst_20 = arith.constant dense<0.000000e+00> : vector<2x512xf32>
    %68 = tpu.matmul %63, %67, %cst_20 {dimension_numbers = #tpu.dot_dimension_numbers<[1], [0], [0], [1], [0, 0, 1, 1], [], []>} : vector<2x128xf32>, vector<128x512xf32>, vector<2x512xf32> -> vector<2x512xf32>
    %69 = arith.addf %66, %68 : vector<2x512xf32>
    %70 = vector.extract_strided_slice %69 {offsets = [0, 0], sizes = [2, 128], strides = [1, 1]} : vector<2x512xf32> to vector<2x128xf32>
    %71 = arith.negf %70 : vector<2x128xf32>
    %72 = math.exp %71 : vector<2x128xf32>
    %cst_21 = arith.constant 1.000000e+00 : f32
    %73 = vector.broadcast %cst_21 : f32 to vector<2x128xf32>
    %74 = arith.addf %73, %72 : vector<2x128xf32>
    %75 = arith.divf %73, %74 : vector<2x128xf32>
    %76 = vector.extract_strided_slice %69 {offsets = [0, 128], sizes = [2, 128], strides = [1, 1]} : vector<2x512xf32> to vector<2x128xf32>
    %77 = arith.negf %76 : vector<2x128xf32>
    %78 = math.exp %77 : vector<2x128xf32>
    %cst_22 = arith.constant 1.000000e+00 : f32
    %79 = vector.broadcast %cst_22 : f32 to vector<2x128xf32>
    %80 = arith.addf %79, %78 : vector<2x128xf32>
    %81 = arith.divf %79, %80 : vector<2x128xf32>
    %82 = vector.extract_strided_slice %69 {offsets = [0, 256], sizes = [2, 128], strides = [1, 1]} : vector<2x512xf32> to vector<2x128xf32>
    %83 = math.tanh %82 : vector<2x128xf32>
    %84 = vector.extract_strided_slice %69 {offsets = [0, 384], sizes = [2, 128], strides = [1, 1]} : vector<2x512xf32> to vector<2x128xf32>
    %85 = arith.negf %84 : vector<2x128xf32>
    %86 = math.exp %85 : vector<2x128xf32>
    %cst_23 = arith.constant 1.000000e+00 : f32
    %87 = vector.broadcast %cst_23 : f32 to vector<2x128xf32>
    %88 = arith.addf %87, %86 : vector<2x128xf32>
    %89 = arith.divf %87, %88 : vector<2x128xf32>
    %90 = arith.mulf %81, %61 : vector<2x128xf32>
    %91 = arith.mulf %75, %83 : vector<2x128xf32>
    %92 = arith.addf %90, %91 : vector<2x128xf32>
    %93 = math.tanh %92 : vector<2x128xf32>
    %94 = arith.mulf %89, %93 : vector<2x128xf32>
    %c3_i32 = arith.constant 3 : i32
    %95 = arith.index_cast %c3_i32 : i32 to index
    %c0_24 = arith.constant 0 : index
    %c0_25 = arith.constant 0 : index
    %96 = vector.load %arg0[%95, %c0_24, %c0_25] : memref<8x2x512xf32, #tpu.memory_space<vmem>>, vector<1x2x512xf32>
    %97 = vector.shape_cast %96 : vector<1x2x512xf32> to vector<2x512xf32>
    %c0_26 = arith.constant 0 : index
    %c0_27 = arith.constant 0 : index
    %98 = vector.load %arg1[%c0_26, %c0_27] : memref<128x512xf32, #tpu.memory_space<vmem>>, vector<128x512xf32>
    %cst_28 = arith.constant dense<0.000000e+00> : vector<2x512xf32>
    %99 = tpu.matmul %94, %98, %cst_28 {dimension_numbers = #tpu.dot_dimension_numbers<[1], [0], [0], [1], [0, 0, 1, 1], [], []>} : vector<2x128xf32>, vector<128x512xf32>, vector<2x512xf32> -> vector<2x512xf32>
    %100 = arith.addf %97, %99 : vector<2x512xf32>
    %101 = vector.extract_strided_slice %100 {offsets = [0, 0], sizes = [2, 128], strides = [1, 1]} : vector<2x512xf32> to vector<2x128xf32>
    %102 = arith.negf %101 : vector<2x128xf32>
    %103 = math.exp %102 : vector<2x128xf32>
    %cst_29 = arith.constant 1.000000e+00 : f32
    %104 = vector.broadcast %cst_29 : f32 to vector<2x128xf32>
    %105 = arith.addf %104, %103 : vector<2x128xf32>
    %106 = arith.divf %104, %105 : vector<2x128xf32>
    %107 = vector.extract_strided_slice %100 {offsets = [0, 128], sizes = [2, 128], strides = [1, 1]} : vector<2x512xf32> to vector<2x128xf32>
    %108 = arith.negf %107 : vector<2x128xf32>
    %109 = math.exp %108 : vector<2x128xf32>
    %cst_30 = arith.constant 1.000000e+00 : f32
    %110 = vector.broadcast %cst_30 : f32 to vector<2x128xf32>
    %111 = arith.addf %110, %109 : vector<2x128xf32>
    %112 = arith.divf %110, %111 : vector<2x128xf32>
    %113 = vector.extract_strided_slice %100 {offsets = [0, 256], sizes = [2, 128], strides = [1, 1]} : vector<2x512xf32> to vector<2x128xf32>
    %114 = math.tanh %113 : vector<2x128xf32>
    %115 = vector.extract_strided_slice %100 {offsets = [0, 384], sizes = [2, 128], strides = [1, 1]} : vector<2x512xf32> to vector<2x128xf32>
    %116 = arith.negf %115 : vector<2x128xf32>
    %117 = math.exp %116 : vector<2x128xf32>
    %cst_31 = arith.constant 1.000000e+00 : f32
    %118 = vector.broadcast %cst_31 : f32 to vector<2x128xf32>
    %119 = arith.addf %118, %117 : vector<2x128xf32>
    %120 = arith.divf %118, %119 : vector<2x128xf32>
    %121 = arith.mulf %112, %92 : vector<2x128xf32>
    %122 = arith.mulf %106, %114 : vector<2x128xf32>
    %123 = arith.addf %121, %122 : vector<2x128xf32>
    %124 = math.tanh %123 : vector<2x128xf32>
    %125 = arith.mulf %120, %124 : vector<2x128xf32>
    %c4_i32 = arith.constant 4 : i32
    %126 = arith.index_cast %c4_i32 : i32 to index
    %c0_32 = arith.constant 0 : index
    %c0_33 = arith.constant 0 : index
    %127 = vector.load %arg0[%126, %c0_32, %c0_33] : memref<8x2x512xf32, #tpu.memory_space<vmem>>, vector<1x2x512xf32>
    %128 = vector.shape_cast %127 : vector<1x2x512xf32> to vector<2x512xf32>
    %c0_34 = arith.constant 0 : index
    %c0_35 = arith.constant 0 : index
    %129 = vector.load %arg1[%c0_34, %c0_35] : memref<128x512xf32, #tpu.memory_space<vmem>>, vector<128x512xf32>
    %cst_36 = arith.constant dense<0.000000e+00> : vector<2x512xf32>
    %130 = tpu.matmul %125, %129, %cst_36 {dimension_numbers = #tpu.dot_dimension_numbers<[1], [0], [0], [1], [0, 0, 1, 1], [], []>} : vector<2x128xf32>, vector<128x512xf32>, vector<2x512xf32> -> vector<2x512xf32>
    %131 = arith.addf %128, %130 : vector<2x512xf32>
    %132 = vector.extract_strided_slice %131 {offsets = [0, 0], sizes = [2, 128], strides = [1, 1]} : vector<2x512xf32> to vector<2x128xf32>
    %133 = arith.negf %132 : vector<2x128xf32>
    %134 = math.exp %133 : vector<2x128xf32>
    %cst_37 = arith.constant 1.000000e+00 : f32
    %135 = vector.broadcast %cst_37 : f32 to vector<2x128xf32>
    %136 = arith.addf %135, %134 : vector<2x128xf32>
    %137 = arith.divf %135, %136 : vector<2x128xf32>
    %138 = vector.extract_strided_slice %131 {offsets = [0, 128], sizes = [2, 128], strides = [1, 1]} : vector<2x512xf32> to vector<2x128xf32>
    %139 = arith.negf %138 : vector<2x128xf32>
    %140 = math.exp %139 : vector<2x128xf32>
    %cst_38 = arith.constant 1.000000e+00 : f32
    %141 = vector.broadcast %cst_38 : f32 to vector<2x128xf32>
    %142 = arith.addf %141, %140 : vector<2x128xf32>
    %143 = arith.divf %141, %142 : vector<2x128xf32>
    %144 = vector.extract_strided_slice %131 {offsets = [0, 256], sizes = [2, 128], strides = [1, 1]} : vector<2x512xf32> to vector<2x128xf32>
    %145 = math.tanh %144 : vector<2x128xf32>
    %146 = vector.extract_strided_slice %131 {offsets = [0, 384], sizes = [2, 128], strides = [1, 1]} : vector<2x512xf32> to vector<2x128xf32>
    %147 = arith.negf %146 : vector<2x128xf32>
    %148 = math.exp %147 : vector<2x128xf32>
    %cst_39 = arith.constant 1.000000e+00 : f32
    %149 = vector.broadcast %cst_39 : f32 to vector<2x128xf32>
    %150 = arith.addf %149, %148 : vector<2x128xf32>
    %151 = arith.divf %149, %150 : vector<2x128xf32>
    %152 = arith.mulf %143, %123 : vector<2x128xf32>
    %153 = arith.mulf %137, %145 : vector<2x128xf32>
    %154 = arith.addf %152, %153 : vector<2x128xf32>
    %155 = math.tanh %154 : vector<2x128xf32>
    %156 = arith.mulf %151, %155 : vector<2x128xf32>
    %c5_i32 = arith.constant 5 : i32
    %157 = arith.index_cast %c5_i32 : i32 to index
    %c0_40 = arith.constant 0 : index
    %c0_41 = arith.constant 0 : index
    %158 = vector.load %arg0[%157, %c0_40, %c0_41] : memref<8x2x512xf32, #tpu.memory_space<vmem>>, vector<1x2x512xf32>
    %159 = vector.shape_cast %158 : vector<1x2x512xf32> to vector<2x512xf32>
    %c0_42 = arith.constant 0 : index
    %c0_43 = arith.constant 0 : index
    %160 = vector.load %arg1[%c0_42, %c0_43] : memref<128x512xf32, #tpu.memory_space<vmem>>, vector<128x512xf32>
    %cst_44 = arith.constant dense<0.000000e+00> : vector<2x512xf32>
    %161 = tpu.matmul %156, %160, %cst_44 {dimension_numbers = #tpu.dot_dimension_numbers<[1], [0], [0], [1], [0, 0, 1, 1], [], []>} : vector<2x128xf32>, vector<128x512xf32>, vector<2x512xf32> -> vector<2x512xf32>
    %162 = arith.addf %159, %161 : vector<2x512xf32>
    %163 = vector.extract_strided_slice %162 {offsets = [0, 0], sizes = [2, 128], strides = [1, 1]} : vector<2x512xf32> to vector<2x128xf32>
    %164 = arith.negf %163 : vector<2x128xf32>
    %165 = math.exp %164 : vector<2x128xf32>
    %cst_45 = arith.constant 1.000000e+00 : f32
    %166 = vector.broadcast %cst_45 : f32 to vector<2x128xf32>
    %167 = arith.addf %166, %165 : vector<2x128xf32>
    %168 = arith.divf %166, %167 : vector<2x128xf32>
    %169 = vector.extract_strided_slice %162 {offsets = [0, 128], sizes = [2, 128], strides = [1, 1]} : vector<2x512xf32> to vector<2x128xf32>
    %170 = arith.negf %169 : vector<2x128xf32>
    %171 = math.exp %170 : vector<2x128xf32>
    %cst_46 = arith.constant 1.000000e+00 : f32
    %172 = vector.broadcast %cst_46 : f32 to vector<2x128xf32>
    %173 = arith.addf %172, %171 : vector<2x128xf32>
    %174 = arith.divf %172, %173 : vector<2x128xf32>
    %175 = vector.extract_strided_slice %162 {offsets = [0, 256], sizes = [2, 128], strides = [1, 1]} : vector<2x512xf32> to vector<2x128xf32>
    %176 = math.tanh %175 : vector<2x128xf32>
    %177 = vector.extract_strided_slice %162 {offsets = [0, 384], sizes = [2, 128], strides = [1, 1]} : vector<2x512xf32> to vector<2x128xf32>
    %178 = arith.negf %177 : vector<2x128xf32>
    %179 = math.exp %178 : vector<2x128xf32>
    %cst_47 = arith.constant 1.000000e+00 : f32
    %180 = vector.broadcast %cst_47 : f32 to vector<2x128xf32>
    %181 = arith.addf %180, %179 : vector<2x128xf32>
    %182 = arith.divf %180, %181 : vector<2x128xf32>
    %183 = arith.mulf %174, %154 : vector<2x128xf32>
    %184 = arith.mulf %168, %176 : vector<2x128xf32>
    %185 = arith.addf %183, %184 : vector<2x128xf32>
    %186 = math.tanh %185 : vector<2x128xf32>
    %187 = arith.mulf %182, %186 : vector<2x128xf32>
    %c6_i32 = arith.constant 6 : i32
    %188 = arith.index_cast %c6_i32 : i32 to index
    %c0_48 = arith.constant 0 : index
    %c0_49 = arith.constant 0 : index
    %189 = vector.load %arg0[%188, %c0_48, %c0_49] : memref<8x2x512xf32, #tpu.memory_space<vmem>>, vector<1x2x512xf32>
    %190 = vector.shape_cast %189 : vector<1x2x512xf32> to vector<2x512xf32>
    %c0_50 = arith.constant 0 : index
    %c0_51 = arith.constant 0 : index
    %191 = vector.load %arg1[%c0_50, %c0_51] : memref<128x512xf32, #tpu.memory_space<vmem>>, vector<128x512xf32>
    %cst_52 = arith.constant dense<0.000000e+00> : vector<2x512xf32>
    %192 = tpu.matmul %187, %191, %cst_52 {dimension_numbers = #tpu.dot_dimension_numbers<[1], [0], [0], [1], [0, 0, 1, 1], [], []>} : vector<2x128xf32>, vector<128x512xf32>, vector<2x512xf32> -> vector<2x512xf32>
    %193 = arith.addf %190, %192 : vector<2x512xf32>
    %194 = vector.extract_strided_slice %193 {offsets = [0, 0], sizes = [2, 128], strides = [1, 1]} : vector<2x512xf32> to vector<2x128xf32>
    %195 = arith.negf %194 : vector<2x128xf32>
    %196 = math.exp %195 : vector<2x128xf32>
    %cst_53 = arith.constant 1.000000e+00 : f32
    %197 = vector.broadcast %cst_53 : f32 to vector<2x128xf32>
    %198 = arith.addf %197, %196 : vector<2x128xf32>
    %199 = arith.divf %197, %198 : vector<2x128xf32>
    %200 = vector.extract_strided_slice %193 {offsets = [0, 128], sizes = [2, 128], strides = [1, 1]} : vector<2x512xf32> to vector<2x128xf32>
    %201 = arith.negf %200 : vector<2x128xf32>
    %202 = math.exp %201 : vector<2x128xf32>
    %cst_54 = arith.constant 1.000000e+00 : f32
    %203 = vector.broadcast %cst_54 : f32 to vector<2x128xf32>
    %204 = arith.addf %203, %202 : vector<2x128xf32>
    %205 = arith.divf %203, %204 : vector<2x128xf32>
    %206 = vector.extract_strided_slice %193 {offsets = [0, 256], sizes = [2, 128], strides = [1, 1]} : vector<2x512xf32> to vector<2x128xf32>
    %207 = math.tanh %206 : vector<2x128xf32>
    %208 = vector.extract_strided_slice %193 {offsets = [0, 384], sizes = [2, 128], strides = [1, 1]} : vector<2x512xf32> to vector<2x128xf32>
    %209 = arith.negf %208 : vector<2x128xf32>
    %210 = math.exp %209 : vector<2x128xf32>
    %cst_55 = arith.constant 1.000000e+00 : f32
    %211 = vector.broadcast %cst_55 : f32 to vector<2x128xf32>
    %212 = arith.addf %211, %210 : vector<2x128xf32>
    %213 = arith.divf %211, %212 : vector<2x128xf32>
    %214 = arith.mulf %205, %185 : vector<2x128xf32>
    %215 = arith.mulf %199, %207 : vector<2x128xf32>
    %216 = arith.addf %214, %215 : vector<2x128xf32>
    %217 = math.tanh %216 : vector<2x128xf32>
    %218 = arith.mulf %213, %217 : vector<2x128xf32>
    %c7_i32 = arith.constant 7 : i32
    %219 = arith.index_cast %c7_i32 : i32 to index
    %c0_56 = arith.constant 0 : index
    %c0_57 = arith.constant 0 : index
    %220 = vector.load %arg0[%219, %c0_56, %c0_57] : memref<8x2x512xf32, #tpu.memory_space<vmem>>, vector<1x2x512xf32>
    %221 = vector.shape_cast %220 : vector<1x2x512xf32> to vector<2x512xf32>
    %c0_58 = arith.constant 0 : index
    %c0_59 = arith.constant 0 : index
    %222 = vector.load %arg1[%c0_58, %c0_59] : memref<128x512xf32, #tpu.memory_space<vmem>>, vector<128x512xf32>
    %cst_60 = arith.constant dense<0.000000e+00> : vector<2x512xf32>
    %223 = tpu.matmul %218, %222, %cst_60 {dimension_numbers = #tpu.dot_dimension_numbers<[1], [0], [0], [1], [0, 0, 1, 1], [], []>} : vector<2x128xf32>, vector<128x512xf32>, vector<2x512xf32> -> vector<2x512xf32>
    %224 = arith.addf %221, %223 : vector<2x512xf32>
    %225 = vector.extract_strided_slice %224 {offsets = [0, 0], sizes = [2, 128], strides = [1, 1]} : vector<2x512xf32> to vector<2x128xf32>
    %226 = arith.negf %225 : vector<2x128xf32>
    %227 = math.exp %226 : vector<2x128xf32>
    %cst_61 = arith.constant 1.000000e+00 : f32
    %228 = vector.broadcast %cst_61 : f32 to vector<2x128xf32>
    %229 = arith.addf %228, %227 : vector<2x128xf32>
    %230 = arith.divf %228, %229 : vector<2x128xf32>
    %231 = vector.extract_strided_slice %224 {offsets = [0, 128], sizes = [2, 128], strides = [1, 1]} : vector<2x512xf32> to vector<2x128xf32>
    %232 = arith.negf %231 : vector<2x128xf32>
    %233 = math.exp %232 : vector<2x128xf32>
    %cst_62 = arith.constant 1.000000e+00 : f32
    %234 = vector.broadcast %cst_62 : f32 to vector<2x128xf32>
    %235 = arith.addf %234, %233 : vector<2x128xf32>
    %236 = arith.divf %234, %235 : vector<2x128xf32>
    %237 = vector.extract_strided_slice %224 {offsets = [0, 256], sizes = [2, 128], strides = [1, 1]} : vector<2x512xf32> to vector<2x128xf32>
    %238 = math.tanh %237 : vector<2x128xf32>
    %239 = vector.extract_strided_slice %224 {offsets = [0, 384], sizes = [2, 128], strides = [1, 1]} : vector<2x512xf32> to vector<2x128xf32>
    %240 = arith.negf %239 : vector<2x128xf32>
    %241 = math.exp %240 : vector<2x128xf32>
    %cst_63 = arith.constant 1.000000e+00 : f32
    %242 = vector.broadcast %cst_63 : f32 to vector<2x128xf32>
    %243 = arith.addf %242, %241 : vector<2x128xf32>
    %244 = arith.divf %242, %243 : vector<2x128xf32>
    %245 = arith.mulf %236, %216 : vector<2x128xf32>
    %246 = arith.mulf %230, %238 : vector<2x128xf32>
    %247 = arith.addf %245, %246 : vector<2x128xf32>
    %248 = math.tanh %247 : vector<2x128xf32>
    %249 = arith.mulf %244, %248 : vector<2x128xf32>
    %c8_i32 = arith.constant 8 : i32
    %c0_64 = arith.constant 0 : index
    %c0_65 = arith.constant 0 : index
    %250 = vector.load %arg2[%c0_64, %c0_65] : memref<2x128xf32, #tpu.memory_space<vmem>>, vector<2x128xf32>
    tpu.vector_store %arg2[%c0_64, %c0_65], %249 {strides = array<i32>} : memref<2x128xf32, #tpu.memory_space<vmem>>, vector<2x128xf32>,
    return
  }
}

</mosaic_0001>

<bundles_post_ra>
// kernel: sentence_lstm_forward.1
= control target key start
LH: loop header
LB: loop body
LE: loop exit
PB: predicated region body
PF: predicated region fallthrough
CT: control target
= control target key end

     0   :  { %v1618_v62 = vmov 0.0   ;;  %vm163_vm0 = vcmask 1041408   ;;  %vm165_vm1 = vcmask 1045508   ;;  %vm167_vm2 = vcmask 1043456   ;;  %s2865_s1 = inlined_call_operand.vmem [shape: f32[128,512], index: 1, kind: input, shape index: {}]   ;;  %s2866_s0 = inlined_call_operand.vmem [shape: f32[8,2,512], index: 0, kind: input, shape index: {}]   ;;  %s2867_s2 = inlined_call_operand.vmem [shape: f32[2,128], index: 2, kind: output, shape index: {}]  }
   0x1   :  { %v1637_v0 = vld [vmem:[%s2865_s1 + $0x1f0] sm:$0xff]  ;;  %v1642_v1 = vld [vmem:[%s2865_s1 + $0x1f8] sm:$0xff]  ;;  %v1669_v6 = vld [vmem:[%s2865_s1 + $0x1e8] sm:$0xff] }
   0x2   :  { %v1647_v2 = vld [vmem:[%s2865_s1 + $0x1d0] sm:$0xff]  ;;  %116 = vmatpush.msra.mxu2 %v1637_v0  ;;  %136 = vmatpush.msra.mxu3 %v1642_v1  ;;  %v1654_v3 = vld [vmem:[%s2865_s1 + $0x1d8] sm:$0xff]  ;;  %v1676_v7 = vld [vmem:[%s2865_s1 + $0x1e0] sm:$0xff] }
   0x3   :  { %v1659_v4 = vld [vmem:[%s2865_s1 + $0x1b0] sm:$0xff]  ;;  %v1664_v5 = vld [vmem:[%s2865_s1 + $0x1b8] sm:$0xff]  ;;  %v1681_v8 = vld [vmem:[%s2865_s1 + $0x1c8] sm:$0xff]  ;;  %96 = vmatpush.msra.mxu1 %v1669_v6  ;;  %76 = vmatpush.msra.mxu0 %v1676_v7 }
   0x4   :  { %117 = vmatpush.msra.mxu2 %v1647_v2  ;;  %137 = vmatpush.msra.mxu3 %v1654_v3  ;;  %v1687_v9 = vld [vmem:[%s2865_s1 + $0x190] sm:$0xff]  ;;  %v1692_v10 = vld [vmem:[%s2865_s1 + $0x198] sm:$0xff]  ;;  %v1698_v11 = vld [vmem:[%s2865_s1 + $0x1c0] sm:$0xff] }
   0x5   :  { %v1705_v12 = vld [vmem:[%s2865_s1 + $0x1a8] sm:$0xff]  ;;  %v1710_v13 = vld [vmem:[%s2865_s1 + $0x1a0] sm:$0xff]  ;;  %97 = vmatpush.msra.mxu1 %v1681_v8  ;;  %v1716_v14 = vld [vmem:[%s2865_s1 + $0x170] sm:$0xff]  ;;  %77 = vmatpush.msra.mxu0 %v1698_v11 }
   0x6   :  { %118 = vmatpush.msra.mxu2 %v1659_v4  ;;  %138 = vmatpush.msra.mxu3 %v1664_v5  ;;  %v1721_v15 = vld [vmem:[%s2865_s1 + $0x178] sm:$0xff]  ;;  %v1729_v16 = vld [vmem:[%s2865_s1 + $0x188] sm:$0xff]  ;;  %v1734_v17 = vld [vmem:[%s2865_s1 + $0x180] sm:$0xff] }
   0x7   :  { %98 = vmatpush.msra.mxu1 %v1705_v12  ;;  %v1740_v18 = vld [vmem:[%s2865_s1 + $0x150] sm:$0xff]  ;;  %v1745_v19 = vld [vmem:[%s2865_s1 + $0x158] sm:$0xff]  ;;  %78 = vmatpush.msra.mxu0 %v1710_v13  ;;  %v1753_v20 = vld [vmem:[%s2865_s1 + $0x168] sm:$0xff] }
   0x8   :  { %119 = vmatpush.msra.mxu2 %v1687_v9  ;;  %139 = vmatpush.msra.mxu3 %v1692_v10  ;;  %v1758_v21 = vld [vmem:[%s2865_s1 + $0x160] sm:$0xff]  ;;  %v1764_v22 = vld [vmem:[%s2865_s1 + $0x130] sm:$0xff]  ;;  %v1769_v23 = vld [vmem:[%s2865_s1 + $0x138] sm:$0xff] }
   0x9   :  { %99 = vmatpush.msra.mxu1 %v1729_v16  ;;  %79 = vmatpush.msra.mxu0 %v1734_v17  ;;  %v1777_v24 = vld [vmem:[%s2865_s1 + $0x148] sm:$0xff]  ;;  %v1782_v25 = vld [vmem:[%s2865_s1 + $0x140] sm:$0xff]  ;;  %v1788_v26 = vld [vmem:[%s2865_s1 + $0x110] sm:$0xff] }
   0xa   :  { %120 = vmatpush.msra.mxu2 %v1716_v14  ;;  %140 = vmatpush.msra.mxu3 %v1721_v15  ;;  %v1793_v27 = vld [vmem:[%s2865_s1 + $0x118] sm:$0xff]  ;;  %v1801_v28 = vld [vmem:[%s2865_s1 + $0x128] sm:$0xff]  ;;  %v1806_v29 = vld [vmem:[%s2865_s1 + $0x120] sm:$0xff] }
   0xb   :  { %100 = vmatpush.msra.mxu1 %v1753_v20  ;;  %80 = vmatpush.msra.mxu0 %v1758_v21  ;;  %v1812_v30 = vld [vmem:[%s2865_s1 + $0xf0] sm:$0xff]  ;;  %v1817_v31 = vld [vmem:[%s2865_s1 + $0xf8] sm:$0xff]  ;;  %v1825_v32 = vld [vmem:[%s2865_s1 + $0x108] sm:$0xff] }
   0xc   :  { %121 = vmatpush.msra.mxu2 %v1740_v18  ;;  %141 = vmatpush.msra.mxu3 %v1745_v19  ;;  %v1830_v33 = vld [vmem:[%s2865_s1 + $0x100] sm:$0xff]  ;;  %v1836_v34 = vld [vmem:[%s2865_s1 + $0xd0] sm:$0xff]  ;;  %v1841_v35 = vld [vmem:[%s2865_s1 + $0xd8] sm:$0xff] }
   0xd   :  { %101 = vmatpush.msra.mxu1 %v1777_v24  ;;  %81 = vmatpush.msra.mxu0 %v1782_v25  ;;  %2976 = vst [vmem:[#allocation2_spill] sm:$0xff] %v1836_v34  ;;  %v1849_v36 = vld [vmem:[%s2865_s1 + $0xe8] sm:$0xff]  ;;  %v1854_v37 = vld [vmem:[%s2865_s1 + $0xe0] sm:$0xff]  ;;  %v1860_v38 = vld [vmem:[%s2865_s1 + $0xb0] sm:$0xff] }
   0xe   :  { %122 = vmatpush.msra.mxu2 %v1764_v22  ;;  %142 = vmatpush.msra.mxu3 %v1769_v23  ;;  %2977 = vst [vmem:[#allocation3_spill] sm:$0xff] %v1841_v35  ;;  %v1865_v39 = vld [vmem:[%s2865_s1 + $0xb8] sm:$0xff]  ;;  %v1873_v40 = vld [vmem:[%s2865_s1 + $0xc8] sm:$0xff]  ;;  %v1878_v41 = vld [vmem:[%s2865_s1 + $0xc0] sm:$0xff] }
   0xf   :  { %102 = vmatpush.msra.mxu1 %v1801_v28  ;;  %82 = vmatpush.msra.mxu0 %v1806_v29  ;;  %2978 = vst [vmem:[#allocation4_spill] sm:$0xff] %v1860_v38  ;;  %v1884_v42 = vld [vmem:[%s2865_s1 + $0x90] sm:$0xff]  ;;  %v1889_v43 = vld [vmem:[%s2865_s1 + $0x98] sm:$0xff]  ;;  %v1897_v44 = vld [vmem:[%s2865_s1 + $0xa8] sm:$0xff] }
  0x10   :  { %123 = vmatpush.msra.mxu2 %v1788_v26  ;;  %143 = vmatpush.msra.mxu3 %v1793_v27  ;;  %2979 = vst [vmem:[#allocation5_spill] sm:$0xff] %v1865_v39  ;;  %v1902_v45 = vld [vmem:[%s2865_s1 + $0xa0] sm:$0xff]  ;;  %v1908_v46 = vld [vmem:[%s2865_s1 + $0x70] sm:$0xff]  ;;  %v1913_v47 = vld [vmem:[%s2865_s1 + $0x78] sm:$0xff] }
  0x11   :  { %103 = vmatpush.msra.mxu1 %v1825_v32  ;;  %83 = vmatpush.msra.mxu0 %v1830_v33  ;;  %2980 = vst [vmem:[#allocation6_spill] sm:$0xff] %v1873_v40  ;;  %v1921_v48 = vld [vmem:[%s2865_s1 + $0x88] sm:$0xff]  ;;  %v1926_v49 = vld [vmem:[%s2865_s1 + $0x80] sm:$0xff]  ;;  %v1932_v50 = vld [vmem:[%s2865_s1 + $0x50] sm:$0xff] }
  0x12   :  { %124 = vmatpush.msra.mxu2 %v1812_v30  ;;  %144 = vmatpush.msra.mxu3 %v1817_v31  ;;  %2981 = vst [vmem:[#allocation7_spill] sm:$0xff] %v1884_v42  ;;  %v1937_v51 = vld [vmem:[%s2865_s1 + $0x58] sm:$0xff]  ;;  %v1945_v52 = vld [vmem:[%s2865_s1 + $0x68] sm:$0xff]  ;;  %v1950_v53 = vld [vmem:[%s2865_s1 + $0x60] sm:$0xff] }
  0x13   :  { %104 = vmatpush.msra.mxu1 %v1849_v36  ;;  %2982 = vst [vmem:[#allocation8_spill] sm:$0xff] %v1889_v43  ;;  %84 = vmatpush.msra.mxu0 %v1854_v37  ;;  %v1956_v54 = vld [vmem:[%s2865_s1 + $0x30] sm:$0xff]  ;;  %v1961_v55 = vld [vmem:[%s2865_s1 + $0x38] sm:$0xff]  ;;  %v1969_v56 = vld [vmem:[%s2865_s1 + $0x48] sm:$0xff] }
  0x14   :  { %125 = vmatpush.msra.mxu2 %v1836_v34  ;;  %145 = vmatpush.msra.mxu3 %v1841_v35  ;;  %2983 = vst [vmem:[#allocation9_spill] sm:$0xff] %v1897_v44  ;;  %v1974_v57 = vld [vmem:[%s2865_s1 + $0x40] sm:$0xff]  ;;  %v1980_v58 = vld [vmem:[%s2865_s1 + $0x10] sm:$0xff]  ;;  %v1985_v59 = vld [vmem:[%s2865_s1 + $0x18] sm:$0xff] }
  0x15   :  { %2984 = vst [vmem:[#allocation10_spill] sm:$0xff] %v1902_v45  ;;  %105 = vmatpush.msra.mxu1 %v1873_v40  ;;  %85 = vmatpush.msra.mxu0 %v1878_v41  ;;  %v1995_v60 = vld [vmem:[%s2865_s1 + $0x28] sm:$0xff]  ;;  %v2000_v61 = vld [vmem:[%s2865_s1 + $0x20] sm:$0xff] }
  0x16   :  { %126 = vmatpush.msra.mxu2 %v1860_v38  ;;  %146 = vmatpush.msra.mxu3 %v1865_v39  ;;  %2985 = vst [vmem:[#allocation11_spill] sm:$0xff] %v1908_v46  ;;  %v2007_v63 = vld [vmem:[%s2865_s1 + $0x8] sm:$0xff] }
  0x17   :  { %2986 = vst [vmem:[#allocation12_spill] sm:$0xff] %v1913_v47  ;;  %106 = vmatpush.msra.mxu1 %v1897_v44  ;;  %86 = vmatpush.msra.mxu0 %v1902_v45 }
  0x18   :  { %127 = vmatpush.msra.mxu2 %v1884_v42  ;;  %147 = vmatpush.msra.mxu3 %v1889_v43  ;;  %2987 = vst [vmem:[#allocation13_spill] sm:$0xff] %v1921_v48 }
  0x19   :  { %2988 = vst [vmem:[#allocation14_spill] sm:$0xff] %v1926_v49  ;;  %107 = vmatpush.msra.mxu1 %v1921_v48  ;;  %87 = vmatpush.msra.mxu0 %v1926_v49 }
  0x1a   :  { %2989 = vst [vmem:[#allocation15_spill] sm:$0xff] %v1932_v50  ;;  %128 = vmatpush.msra.mxu2 %v1908_v46  ;;  %148 = vmatpush.msra.mxu3 %v1913_v47 }
  0x1b   :  { %2990 = vst [vmem:[#allocation16_spill] sm:$0xff] %v1937_v51  ;;  %108 = vmatpush.msra.mxu1 %v1945_v52  ;;  %88 = vmatpush.msra.mxu0 %v1950_v53 }
  0x1c   :  { %2991 = vst [vmem:[#allocation17_spill] sm:$0xff] %v1945_v52  ;;  %129 = vmatpush.msra.mxu2 %v1932_v50  ;;  %149 = vmatpush.msra.mxu3 %v1937_v51 }
  0x1d   :  { %2992 = vst [vmem:[#allocation18_spill] sm:$0xff] %v1950_v53  ;;  %109 = vmatpush.msra.mxu1 %v1969_v56  ;;  %89 = vmatpush.msra.mxu0 %v1974_v57 }
  0x1e   :  { %2993 = vst [vmem:[#allocation19_spill] sm:$0xff] %v1956_v54  ;;  %130 = vmatpush.msra.mxu2 %v1956_v54  ;;  %150 = vmatpush.msra.mxu3 %v1961_v55 }
  0x1f   :  { %2994 = vst [vmem:[#allocation20_spill] sm:$0xff] %v1961_v55  ;;  %v2012_v55 = vld [vmem:[%s2865_s1] sm:$0xff]  ;;  %110 = vmatpush.msra.mxu1 %v1995_v60  ;;  %90 = vmatpush.msra.mxu0 %v2000_v61 }
  0x20   :  { %2995 = vst [vmem:[#allocation21_spill] sm:$0xff] %v1969_v56  ;;  %131 = vmatpush.msra.mxu2 %v1980_v58  ;;  %151 = vmatpush.msra.mxu3 %v1985_v59 }
  0x21   :  { %2996 = vst [vmem:[#allocation22_spill] sm:$0xff] %v1974_v57  ;;  %132 = vmatmul.f32.vlgmr.msra.gmra.mxu2 %v1618_v62  ;;  %152 = vmatmul.f32.vlgmr.msra.gmra.mxu3 %v1618_v62 }
  0x22   :  { %2997 = vst [vmem:[#allocation23_spill] sm:$0xff] %v1980_v58  ;;  %283 = vmatpush.msrb.mxu2 %v1637_v0  ;;  %303 = vmatpush.msrb.mxu3 %v1642_v1 }
  0x23   :  { %2998 = vst [vmem:[#allocation24_spill] sm:$0xff] %v1985_v59  ;;  %111 = vmatpush.msra.mxu1 %v2007_v63  ;;  %91 = vmatpush.msra.mxu0 %v2012_v55 }
  0x24   :  { %2999 = vst [vmem:[#allocation25_spill] sm:$0xff] %v1995_v60  ;;  %112 = vmatmul.f32.vlgmr.msra.gmra.mxu1 %v1618_v62  ;;  %92 = vmatmul.f32.vlgmr.msra.gmra.mxu0 %v1618_v62 }
  0x25   :  { %3000 = vst [vmem:[#allocation26_spill] sm:$0xff] %v2000_v61  ;;  %243 = vmatpush.msrb.mxu0 %v1676_v7  ;;  %263 = vmatpush.msrb.mxu1 %v1669_v6 }
  0x26   :  { %3001 = vst [vmem:[#allocation27_spill] sm:$0xff] %v2007_v63  ;;  %284 = vmatpush.msrb.mxu2 %v1647_v2  ;;  %304 = vmatpush.msrb.mxu3 %v1654_v3  ;;  %v3003_v62 = vld [vmem:[#allocation20_spill] sm:$0xff] }
  0x27   :  { %3002 = vst [vmem:[#allocation28_spill] sm:$0xff] %v2012_v55  ;;  %244 = vmatpush.msrb.mxu0 %v1698_v11  ;;  %264 = vmatpush.msrb.mxu1 %v1681_v8 }
  0x28   :  { %285 = vmatpush.msrb.mxu2 %v1659_v4  ;;  %305 = vmatpush.msrb.mxu3 %v1664_v5 }
  0x29   :  { %245 = vmatpush.msrb.mxu0 %v1710_v13  ;;  %265 = vmatpush.msrb.mxu1 %v1705_v12 }
  0x2a   :  { %286 = vmatpush.msrb.mxu2 %v1687_v9  ;;  %306 = vmatpush.msrb.mxu3 %v1692_v10 }
  0x2b   :  { %246 = vmatpush.msrb.mxu0 %v1734_v17  ;;  %266 = vmatpush.msrb.mxu1 %v1729_v16 }
  0x2c   :  { %287 = vmatpush.msrb.mxu2 %v1716_v14  ;;  %307 = vmatpush.msrb.mxu3 %v1721_v15 }
  0x2d   :  { %247 = vmatpush.msrb.mxu0 %v1758_v21  ;;  %267 = vmatpush.msrb.mxu1 %v1753_v20 }
  0x2e   :  { %288 = vmatpush.msrb.mxu2 %v1740_v18  ;;  %308 = vmatpush.msrb.mxu3 %v1745_v19 }
  0x2f   :  { %248 = vmatpush.msrb.mxu0 %v1782_v25  ;;  %268 = vmatpush.msrb.mxu1 %v1777_v24 }
  0x30   :  { %289 = vmatpush.msrb.mxu2 %v1764_v22  ;;  %309 = vmatpush.msrb.mxu3 %v1769_v23 }
  0x31   :  { %249 = vmatpush.msrb.mxu0 %v1806_v29  ;;  %269 = vmatpush.msrb.mxu1 %v1801_v28 }
  0x32   :  { %290 = vmatpush.msrb.mxu2 %v1788_v26  ;;  %310 = vmatpush.msrb.mxu3 %v1793_v27 }
  0x33   :  { %250 = vmatpush.msrb.mxu0 %v1830_v33  ;;  %270 = vmatpush.msrb.mxu1 %v1825_v32 }
  0x34   :  { %291 = vmatpush.msrb.mxu2 %v1812_v30  ;;  %311 = vmatpush.msrb.mxu3 %v1817_v31 }
  0x35   :  { %251 = vmatpush.msrb.mxu0 %v1854_v37  ;;  %271 = vmatpush.msrb.mxu1 %v1849_v36 }
  0x36   :  { %292 = vmatpush.msrb.mxu2 %v1836_v34  ;;  %312 = vmatpush.msrb.mxu3 %v1841_v35 }
  0x37   :  { %252 = vmatpush.msrb.mxu0 %v1878_v41  ;;  %272 = vmatpush.msrb.mxu1 %v1873_v40 }
  0x38   :  { %293 = vmatpush.msrb.mxu2 %v1860_v38  ;;  %313 = vmatpush.msrb.mxu3 %v1865_v39 }
  0x39   :  { %253 = vmatpush.msrb.mxu0 %v1902_v45  ;;  %273 = vmatpush.msrb.mxu1 %v1897_v44 }
  0x3a   :  { %294 = vmatpush.msrb.mxu2 %v1884_v42  ;;  %314 = vmatpush.msrb.mxu3 %v1889_v43 }
  0x3b   :  { %254 = vmatpush.msrb.mxu0 %v1926_v49  ;;  %274 = vmatpush.msrb.mxu1 %v1921_v48 }
  0x3c   :  { %295 = vmatpush.msrb.mxu2 %v1908_v46  ;;  %315 = vmatpush.msrb.mxu3 %v1913_v47 }
  0x3d   :  { %255 = vmatpush.msrb.mxu0 %v1950_v53  ;;  %275 = vmatpush.msrb.mxu1 %v1945_v52 }
  0x3e   :  { %296 = vmatpush.msrb.mxu2 %v1932_v50  ;;  %316 = vmatpush.msrb.mxu3 %v1937_v51 }
  0x3f   :  { %256 = vmatpush.msrb.mxu0 %v1974_v57  ;;  %276 = vmatpush.msrb.mxu1 %v1969_v56 }
  0x40   :  { %297 = vmatpush.msrb.mxu2 %v1956_v54  ;;  %317 = vmatpush.msrb.mxu3 %v3003_v62 }
  0x41   :  { %257 = vmatpush.msrb.mxu0 %v2000_v61  ;;  %277 = vmatpush.msrb.mxu1 %v1995_v60 }
  0x42   :  { %298 = vmatpush.msrb.mxu2 %v1980_v58  ;;  %318 = vmatpush.msrb.mxu3 %v1985_v59 }
  0x43   :  { %258 = vmatpush.msrb.mxu0 %v2012_v55  ;;  %278 = vmatpush.msrb.mxu1 %v2007_v63 }
  0x44   :  { %447 = vmatpush.msra.mxu2 %v1637_v0  ;;  %467 = vmatpush.msra.mxu3 %v1642_v1 }
  0x45   :  { %407 = vmatpush.msra.mxu0 %v1676_v7  ;;  %427 = vmatpush.msra.mxu1 %v1669_v6 }
  0x46   :  { %448 = vmatpush.msra.mxu2 %v1647_v2  ;;  %468 = vmatpush.msra.mxu3 %v1654_v3 }
  0x47   :  { %408 = vmatpush.msra.mxu0 %v1698_v11  ;;  %428 = vmatpush.msra.mxu1 %v1681_v8 }
  0x48   :  { %449 = vmatpush.msra.mxu2 %v1659_v4  ;;  %469 = vmatpush.msra.mxu3 %v1664_v5 }
  0x49   :  { %409 = vmatpush.msra.mxu0 %v1710_v13  ;;  %429 = vmatpush.msra.mxu1 %v1705_v12 }
  0x4a   :  { %450 = vmatpush.msra.mxu2 %v1687_v9  ;;  %470 = vmatpush.msra.mxu3 %v1692_v10 }
  0x4b   :  { %410 = vmatpush.msra.mxu0 %v1734_v17  ;;  %430 = vmatpush.msra.mxu1 %v1729_v16 }
  0x4c   :  { %451 = vmatpush.msra.mxu2 %v1716_v14  ;;  %471 = vmatpush.msra.mxu3 %v1721_v15 }
  0x4d   :  { %411 = vmatpush.msra.mxu0 %v1758_v21  ;;  %431 = vmatpush.msra.mxu1 %v1753_v20 }
  0x4e   :  { %452 = vmatpush.msra.mxu2 %v1740_v18  ;;  %472 = vmatpush.msra.mxu3 %v1745_v19 }
  0x4f   :  { %412 = vmatpush.msra.mxu0 %v1782_v25  ;;  %432 = vmatpush.msra.mxu1 %v1777_v24 }
  0x50   :  { %453 = vmatpush.msra.mxu2 %v1764_v22  ;;  %473 = vmatpush.msra.mxu3 %v1769_v23 }
  0x51   :  { %413 = vmatpush.msra.mxu0 %v1806_v29  ;;  %433 = vmatpush.msra.mxu1 %v1801_v28 }
  0x52   :  { %454 = vmatpush.msra.mxu2 %v1788_v26  ;;  %474 = vmatpush.msra.mxu3 %v1793_v27 }
  0x53   :  { %414 = vmatpush.msra.mxu0 %v1830_v33  ;;  %434 = vmatpush.msra.mxu1 %v1825_v32 }
  0x54   :  { %455 = vmatpush.msra.mxu2 %v1812_v30  ;;  %475 = vmatpush.msra.mxu3 %v1817_v31 }
  0x55   :  { %415 = vmatpush.msra.mxu0 %v1854_v37  ;;  %435 = vmatpush.msra.mxu1 %v1849_v36 }
  0x56   :  { %456 = vmatpush.msra.mxu2 %v1836_v34  ;;  %476 = vmatpush.msra.mxu3 %v1841_v35 }
  0x57   :  { %416 = vmatpush.msra.mxu0 %v1878_v41  ;;  %436 = vmatpush.msra.mxu1 %v1873_v40 }
  0x58   :  { %457 = vmatpush.msra.mxu2 %v1860_v38  ;;  %477 = vmatpush.msra.mxu3 %v1865_v39 }
  0x59   :  { %417 = vmatpush.msra.mxu0 %v1902_v45  ;;  %437 = vmatpush.msra.mxu1 %v1897_v44 }
  0x5a   :  { %458 = vmatpush.msra.mxu2 %v1884_v42  ;;  %478 = vmatpush.msra.mxu3 %v1889_v43 }
  0x5b   :  { %418 = vmatpush.msra.mxu0 %v1926_v49  ;;  %438 = vmatpush.msra.mxu1 %v1921_v48 }
  0x5c   :  { %459 = vmatpush.msra.mxu2 %v1908_v46  ;;  %479 = vmatpush.msra.mxu3 %v1913_v47 }
  0x5d   :  { %419 = vmatpush.msra.mxu0 %v1950_v53  ;;  %439 = vmatpush.msra.mxu1 %v1945_v52 }
  0x5e   :  { %460 = vmatpush.msra.mxu2 %v1932_v50  ;;  %480 = vmatpush.msra.mxu3 %v1937_v51 }
  0x5f   :  { %420 = vmatpush.msra.mxu0 %v1974_v57  ;;  %440 = vmatpush.msra.mxu1 %v1969_v56 }
  0x60   :  { %461 = vmatpush.msra.mxu2 %v1956_v54  ;;  %481 = vmatpush.msra.mxu3 %v3003_v62 }
  0x61   :  { %421 = vmatpush.msra.mxu0 %v2000_v61  ;;  %441 = vmatpush.msra.mxu1 %v1995_v60 }
  0x62   :  { %462 = vmatpush.msra.mxu2 %v1980_v58  ;;  %482 = vmatpush.msra.mxu3 %v1985_v59 }
  0x63   :  { %422 = vmatpush.msra.mxu0 %v2012_v55  ;;  %442 = vmatpush.msra.mxu1 %v2007_v63  ;;  %v11_v63 = vld [vmem:[%s2866_s0] sm:$0xff] }
  0xa1   :  { %v113_v56 = vpop.f32.mrf.mxu1  ;;  %v93_v50 = vpop.f32.mrf.mxu0 }
  0xa2   :  { %v160_v51 = vrot.slane %v113_v56, 6 }
  0xa4   :  { %v133_v57 = vpop.f32.mrf.mxu2  ;;  %v153_v61 = vpop.f32.mrf.mxu3  ;;  %v164_v54 = vsel %vm163_vm0, %v93_v50, %v160_v51 }
  0xa5   :  { %v161_v60 = vrot.slane %v133_v57, 4  ;;  %v162_v47 = vrot.slane %v153_v61, 2 }
  0xa7   :  { %v166_v58 = vsel %vm165_vm1, %v161_v60, %v162_v47 }
  0xa8   :  { %v168_v59 = vsel %vm167_vm2, %v164_v54, %v166_v58 }
  0xa9   :  { %v170_v55 = vadd.f32 %v168_v59, %v11_v63 }
  0xab   :  { %v1394_v62 = vmul.f32 -1.442695, %v170_v55  ;;  %v191_v46 = vrot.slane %v170_v55, 2  ;;  %v215_v56 = vrot.slane %v170_v55, 6  ;;  %v212_v59 = vrot.slane %v170_v55, 4 }
  0xad   :  { %1426 = vpow2.f32 %v1394_v62  ;;  %v1395_v52 = vmul.f32 -1.442695, %v191_v46  ;;  %v1396_v53 = vmul.f32 -1.442695, %v215_v56 }
  0xaf   :  { %1428 = vpow2.f32 %v1395_v52 }
  0xb0   :  { %1430 = vpow2.f32 %v1396_v53 }
  0xb3   :  { %v1427_v57 = vpop.eup %1426 }
  0xb4   :  { %v174_v50 = vadd.f32 1.0, %v1427_v57 }
  0xb5   :  { %v1429_v51 = vpop.eup %1428 }
  0xb6   :  { %v1431_v61 = vpop.eup %1430  ;;  %1432 = vrcp.f32 %v174_v50  ;;  %v196_v43 = vadd.f32 1.0, %v1429_v51  ;;  %v186_v46 = vand.u32 2147483648, %v174_v50  ;;  %v184_v57 = vand.u32 2147483647, %v174_v50 }
  0xb7   :  { %v220_v42 = vadd.f32 1.0, %v1431_v61  ;;  %vm180_vm4 = vweird.f32 %v174_v50 }
  0xb8   :  { %1434 = vrcp.f32 %v196_v43  ;;  %v208_v48 = vand.u32 2147483648, %v196_v43  ;;  %v206_v49 = vand.u32 2147483647, %v196_v43  ;;  %v187_v39 = vor.u32 1.1754944e-38, %v186_v46 }
  0xb9   :  { %1436 = vrcp.f32 %v220_v42  ;;  %vm185_vm7 = vcmp.eq.f32.partialorder %v184_v57, 8.507059e+37  ;;  %vm202_vm8 = vweird.f32 %v196_v43  ;;  %v232_v46 = vand.u32 2147483648, %v220_v42  ;;  %v3012_v57 = vld [vmem:[#allocation7_spill] sm:$0xff] }
  0xba   :  { %1438 = vtanh.f32 %v212_v59  ;;  %vm207_vm10 = vcmp.eq.f32.partialorder %v206_v49, 8.507059e+37  ;;  %vm226_vm12 = vweird.f32 %v220_v42 }
  0xbc   :  { %v1433_v47 = vpop.eup %1432 }
  0xbd   :  { %v176_v54 = vmul.f32 %v1433_v47, %v174_v50  ;;  %vm181_vm3 = vweird.f32 %v1433_v47 }
  0xbe   :  { %v1435_v58 = vpop.eup %1434  ;;  %vm182_vm6 = vmor %vm180_vm4, %vm181_vm3 }
  0xbf   :  { %v1437_v60 = vpop.eup %1436  ;;  %v177_v63 = vsub.f32 1.0, %v176_v54  ;;  %v198_v62 = vmul.f32 %v1435_v58, %v196_v43  ;;  %vm203_vm5 = vweird.f32 %v1435_v58  ;;  %v233_v43 = vor.u32 1.1754944e-38, %v232_v46  ;;  %v3022_v46 = vld [vmem:[#allocation26_spill] sm:$0xff] }
  0xc0   :  { %v222_v56 = vmul.f32 %v1437_v60, %v220_v42  ;;  %vm204_vm9 = vmor %vm202_vm8, %vm203_vm5  ;;  %v1439_v45 = vpop.eup %1438  ;;  %vm227_vm11 = vweird.f32 %v1437_v60 }
  0xc1   :  { %v199_v52 = vsub.f32 1.0, %v198_v62  ;;  %v178_v53 = vmul.f32 %v1433_v47, %v177_v63  ;;  %v209_v62 = vor.u32 1.1754944e-38, %v208_v48  ;;  %vm228_vm13 = vmor %vm226_vm12, %vm227_vm11 }
  0xc2   :  { %v223_v38 = vsub.f32 1.0, %v222_v56  ;;  %v3011_v56 = vld [vmem:[#allocation13_spill] sm:$0xff] }
  0xc3   :  { %v179_v51 = vadd.f32 %v1433_v47, %v178_v53  ;;  %v200_v61 = vmul.f32 %v1435_v58, %v199_v52 }
  0xc4   :  { %v224_v50 = vmul.f32 %v1437_v60, %v223_v38  ;;  %v3006_v38 = vld [vmem:[#allocation10_spill] sm:$0xff] }
  0xc5   :  { %v183_v55 = vsel %vm182_vm6, %v1433_v47, %v179_v51  ;;  %v201_v54 = vadd.f32 %v1435_v58, %v200_v61  ;;  %v230_v47 = vand.u32 2147483647, %v220_v42  ;;  %v3007_v42 = vld [vmem:[#allocation9_spill] sm:$0xff]  ;;  %v3013_v51 = vld [vmem:[#allocation8_spill] sm:$0xff]  ;;  %v3014_v61 = vld [vmem:[#allocation18_spill] sm:$0xff] }
  0xc6   :  { %v188_v44 = vsel %vm185_vm7, %v187_v39, %v183_v55  ;;  %v225_v34 = vadd.f32 %v1437_v60, %v224_v50  ;;  %v3015_v55 = vld [vmem:[#allocation17_spill] sm:$0xff]  ;;  %v3020_v50 = vld [vmem:[#allocation15_spill] sm:$0xff] }
  0xc7   :  { %v205_v63 = vsel %vm204_vm9, %v1435_v58, %v201_v54  ;;  %v237_v53 = vmul.f32 %v1439_v45, %v188_v44  ;;  %vm231_vm14 = vcmp.eq.f32.partialorder %v230_v47, 8.507059e+37  ;;  %v3008_v44 = vld [vmem:[#allocation4_spill] sm:$0xff]  ;;  %v3009_v45 = vld [vmem:[#allocation5_spill] sm:$0xff]  ;;  %v3016_v54 = vld [vmem:[#allocation11_spill] sm:$0xff] }
  0xc8   :  { %v210_v59 = vsel %vm207_vm10, %v209_v62, %v205_v63  ;;  %v229_v39 = vsel %vm228_vm13, %v1437_v60, %v225_v34  ;;  %v3004_v34 = vld [vmem:[#allocation2_spill] sm:$0xff]  ;;  %v3017_v62 = vld [vmem:[#allocation12_spill] sm:$0xff]  ;;  %v3023_v47 = vld [vmem:[#allocation25_spill] sm:$0xff] }
  0xc9   :  { %v236_v35 = vmul.f32 0.0, %v210_v59  ;;  %v234_v49 = vsel %vm231_vm14, %v233_v43, %v229_v39  ;;  %v3010_v60 = vld [vmem:[#allocation14_spill] sm:$0xff]  ;;  %v3019_v59 = vld [vmem:[#allocation21_spill] sm:$0xff]  ;;  %v3024_v39 = vld [vmem:[#allocation19_spill] sm:$0xff] }
  0xca   :  { %v3018_v63 = vld [vmem:[#allocation22_spill] sm:$0xff]  ;;  %v3025_v43 = vld [vmem:[#allocation20_spill] sm:$0xff] }
  0xcb   :  { %v2152_v52 = vadd.f32 %v237_v53, %v236_v35  ;;  %v3005_v35 = vld [vmem:[#allocation3_spill] sm:$0xff]  ;;  %v3021_v53 = vld [vmem:[#allocation16_spill] sm:$0xff] }
  0xcd   :  { %1440 = vtanh.f32 %v2152_v52 }
  0xd3   :  { %v1441_v48 = vpop.eup %1440 }
  0xd4   :  { %v240_v58 = vmul.f32 %v1441_v48, %v234_v49  ;;  %v3026_v48 = vld [vmem:[#allocation28_spill] sm:$0xff]  ;;  %v3027_v49 = vld [vmem:[#allocation27_spill] sm:$0xff] }
  0xd6   :  { %259 = vmatmul.f32.vlgmr.msrb.gmra.mxu0 %v240_v58  ;;  %279 = vmatmul.f32.vlgmr.msrb.gmra.mxu1 %v240_v58 }
  0xd7   :  { %299 = vmatmul.f32.vlgmr.msrb.gmra.mxu2 %v240_v58  ;;  %319 = vmatmul.f32.vlgmr.msrb.gmra.mxu3 %v240_v58  ;;  %v3028_v58 = vld [vmem:[#allocation23_spill] sm:$0xff] }
  0xd8   :  { %571 = vmatpush.msrb.mxu0 %v1676_v7  ;;  %591 = vmatpush.msrb.mxu1 %v1669_v6 }
  0xd9   :  { %611 = vmatpush.msrb.mxu2 %v1637_v0  ;;  %631 = vmatpush.msrb.mxu3 %v1642_v1 }
  0xda   :  { %572 = vmatpush.msrb.mxu0 %v1698_v11  ;;  %592 = vmatpush.msrb.mxu1 %v1681_v8 }
  0xdb   :  { %612 = vmatpush.msrb.mxu2 %v1647_v2  ;;  %632 = vmatpush.msrb.mxu3 %v1654_v3 }
  0xdc   :  { %573 = vmatpush.msrb.mxu0 %v1710_v13  ;;  %593 = vmatpush.msrb.mxu1 %v1705_v12 }
  0xdd   :  { %613 = vmatpush.msrb.mxu2 %v1659_v4  ;;  %633 = vmatpush.msrb.mxu3 %v1664_v5 }
  0xde   :  { %574 = vmatpush.msrb.mxu0 %v1734_v17  ;;  %594 = vmatpush.msrb.mxu1 %v1729_v16 }
  0xdf   :  { %614 = vmatpush.msrb.mxu2 %v1687_v9  ;;  %634 = vmatpush.msrb.mxu3 %v1692_v10 }
  0xe0   :  { %575 = vmatpush.msrb.mxu0 %v1758_v21  ;;  %595 = vmatpush.msrb.mxu1 %v1753_v20 }
  0xe1   :  { %615 = vmatpush.msrb.mxu2 %v1716_v14  ;;  %635 = vmatpush.msrb.mxu3 %v1721_v15 }
  0xe2   :  { %576 = vmatpush.msrb.mxu0 %v1782_v25  ;;  %596 = vmatpush.msrb.mxu1 %v1777_v24 }
  0xe3   :  { %616 = vmatpush.msrb.mxu2 %v1740_v18  ;;  %636 = vmatpush.msrb.mxu3 %v1745_v19 }
  0xe4   :  { %577 = vmatpush.msrb.mxu0 %v1806_v29  ;;  %597 = vmatpush.msrb.mxu1 %v1801_v28 }
  0xe5   :  { %617 = vmatpush.msrb.mxu2 %v1764_v22  ;;  %637 = vmatpush.msrb.mxu3 %v1769_v23 }
  0xe6   :  { %578 = vmatpush.msrb.mxu0 %v1830_v33  ;;  %598 = vmatpush.msrb.mxu1 %v1825_v32 }
  0xe7   :  { %618 = vmatpush.msrb.mxu2 %v1788_v26  ;;  %638 = vmatpush.msrb.mxu3 %v1793_v27 }
  0xe8   :  { %579 = vmatpush.msrb.mxu0 %v1854_v37  ;;  %599 = vmatpush.msrb.mxu1 %v1849_v36 }
  0xe9   :  { %619 = vmatpush.msrb.mxu2 %v1812_v30  ;;  %639 = vmatpush.msrb.mxu3 %v1817_v31 }
  0xea   :  { %580 = vmatpush.msrb.mxu0 %v1878_v41  ;;  %600 = vmatpush.msrb.mxu1 %v1873_v40 }
  0xeb   :  { %620 = vmatpush.msrb.mxu2 %v3004_v34  ;;  %640 = vmatpush.msrb.mxu3 %v3005_v35 }
  0xec   :  { %581 = vmatpush.msrb.mxu0 %v3006_v38  ;;  %601 = vmatpush.msrb.mxu1 %v3007_v42 }
  0xed   :  { %621 = vmatpush.msrb.mxu2 %v3008_v44  ;;  %641 = vmatpush.msrb.mxu3 %v3009_v45 }
  0xee   :  { %582 = vmatpush.msrb.mxu0 %v3010_v60  ;;  %602 = vmatpush.msrb.mxu1 %v3011_v56 }
  0xef   :  { %622 = vmatpush.msrb.mxu2 %v3012_v57  ;;  %642 = vmatpush.msrb.mxu3 %v3013_v51 }
  0xf0   :  { %583 = vmatpush.msrb.mxu0 %v3014_v61  ;;  %603 = vmatpush.msrb.mxu1 %v3015_v55 }
  0xf1   :  { %623 = vmatpush.msrb.mxu2 %v3016_v54  ;;  %643 = vmatpush.msrb.mxu3 %v3017_v62 }
  0xf2   :  { %584 = vmatpush.msrb.mxu0 %v3018_v63  ;;  %604 = vmatpush.msrb.mxu1 %v3019_v59  ;;  %v3029_v63 = vld [vmem:[#allocation24_spill] sm:$0xff] }
  0xf3   :  { %624 = vmatpush.msrb.mxu2 %v3020_v50  ;;  %644 = vmatpush.msrb.mxu3 %v3021_v53 }
  0xf4   :  { %585 = vmatpush.msrb.mxu0 %v3022_v46  ;;  %605 = vmatpush.msrb.mxu1 %v3023_v47 }
  0xf5   :  { %625 = vmatpush.msrb.mxu2 %v3024_v39  ;;  %645 = vmatpush.msrb.mxu3 %v3025_v43  ;;  %v1397_v39 = vld [vmem:[%s2866_s0 + $0x8] sm:$0xff] }
  0xf6   :  { %586 = vmatpush.msrb.mxu0 %v3026_v48  ;;  %606 = vmatpush.msrb.mxu1 %v3027_v49 }
  0xf7   :  { %626 = vmatpush.msrb.mxu2 %v3028_v58  ;;  %646 = vmatpush.msrb.mxu3 %v3029_v63 }
 0x153   :  { %v280_v59 = vpop.f32.mrf.mxu1  ;;  %v260_v55 = vpop.f32.mrf.mxu0 }
 0x154   :  { %v327_v50 = vrot.slane %v280_v59, 6 }
 0x156   :  { %v330_v43 = vsel %vm163_vm0, %v260_v55, %v327_v50 }
 0x15a   :  { %v300_v62 = vpop.f32.mrf.mxu2  ;;  %v320_v53 = vpop.f32.mrf.mxu3 }
 0x15b   :  { %v328_v54 = vrot.slane %v300_v62, 4  ;;  %v329_v46 = vrot.slane %v320_v53, 2 }
 0x15d   :  { %v331_v48 = vsel %vm165_vm1, %v328_v54, %v329_v46 }
 0x15e   :  { %v332_v49 = vsel %vm167_vm2, %v330_v43, %v331_v48 }
 0x15f   :  { %v334_v58 = vadd.f32 %v1397_v39, %v332_v49 }
 0x161   :  { %v1398_v47 = vmul.f32 -1.442695, %v334_v58  ;;  %v355_v63 = vrot.slane %v334_v58, 2  ;;  %v379_v61 = vrot.slane %v334_v58, 6  ;;  %v376_v39 = vrot.slane %v334_v58, 4 }
 0x163   :  { %1442 = vpow2.f32 %v1398_v47  ;;  %v1399_v59 = vmul.f32 -1.442695, %v355_v63  ;;  %v1400_v51 = vmul.f32 -1.442695, %v379_v61 }
 0x165   :  { %1444 = vpow2.f32 %v1399_v59 }
 0x166   :  { %1446 = vpow2.f32 %v1400_v51 }
 0x169   :  { %v1443_v62 = vpop.eup %1442 }
 0x16a   :  { %v338_v53 = vadd.f32 1.0, %v1443_v62 }
 0x16b   :  { %v1445_v57 = vpop.eup %1444 }
 0x16c   :  { %v1447_v56 = vpop.eup %1446  ;;  %1448 = vrcp.f32 %v338_v53  ;;  %v360_v60 = vadd.f32 1.0, %v1445_v57  ;;  %v350_v63 = vand.u32 2147483648, %v338_v53  ;;  %v348_v51 = vand.u32 2147483647, %v338_v53 }
 0x16d   :  { %v384_v55 = vadd.f32 1.0, %v1447_v56  ;;  %vm344_vm3 = vweird.f32 %v338_v53 }
 0x16e   :  { %1450 = vrcp.f32 %v360_v60  ;;  %v372_v62 = vand.u32 2147483648, %v360_v60  ;;  %v370_v45 = vand.u32 2147483647, %v360_v60  ;;  %v351_v44 = vor.u32 1.1754944e-38, %v350_v63 }
 0x16f   :  { %1452 = vrcp.f32 %v384_v55  ;;  %vm349_vm6 = vcmp.eq.f32.partialorder %v348_v51, 8.507059e+37  ;;  %vm366_vm7 = vweird.f32 %v360_v60  ;;  %v396_v63 = vand.u32 2147483648, %v384_v55 }
 0x170   :  { %1454 = vtanh.f32 %v376_v39  ;;  %vm371_vm9 = vcmp.eq.f32.partialorder %v370_v45, 8.507059e+37  ;;  %vm390_vm11 = vweird.f32 %v384_v55 }
 0x172   :  { %v1449_v54 = vpop.eup %1448 }
 0x173   :  { %v340_v50 = vmul.f32 %v1449_v54, %v338_v53  ;;  %vm345_vm15 = vweird.f32 %v1449_v54 }
 0x174   :  { %v1451_v46 = vpop.eup %1450  ;;  %vm346_vm5 = vmor %vm344_vm3, %vm345_vm15 }
 0x175   :  { %v1453_v43 = vpop.eup %1452  ;;  %v341_v48 = vsub.f32 1.0, %v340_v50  ;;  %v362_v47 = vmul.f32 %v1451_v46, %v360_v60  ;;  %vm367_vm4 = vweird.f32 %v1451_v46  ;;  %v394_v60 = vand.u32 2147483647, %v384_v55 }
 0x176   :  { %v386_v61 = vmul.f32 %v1453_v43, %v384_v55  ;;  %vm368_vm8 = vmor %vm366_vm7, %vm367_vm4  ;;  %vm391_vm10 = vweird.f32 %v1453_v43 }
 0x177   :  { %v342_v49 = vmul.f32 %v1449_v54, %v341_v48  ;;  %v363_v59 = vsub.f32 1.0, %v362_v47  ;;  %v373_v48 = vor.u32 1.1754944e-38, %v372_v62  ;;  %v1455_v47 = vpop.eup %1454  ;;  %vm392_vm12 = vmor %vm390_vm11, %vm391_vm10  ;;  %vm395_vm13 = vcmp.eq.f32.partialorder %v394_v60, 8.507059e+37 }
 0x178   :  { %v387_v42 = vsub.f32 1.0, %v386_v61 }
 0x179   :  { %v343_v57 = vadd.f32 %v1449_v54, %v342_v49  ;;  %v364_v56 = vmul.f32 %v1451_v46, %v363_v59 }
 0x17a   :  { %v388_v53 = vmul.f32 %v1453_v43, %v387_v42 }
 0x17b   :  { %v347_v58 = vsel %vm346_vm5, %v1449_v54, %v343_v57  ;;  %v365_v50 = vadd.f32 %v1451_v46, %v364_v56  ;;  %v397_v54 = vor.u32 1.1754944e-38, %v396_v63 }
 0x17c   :  { %v352_v38 = vsel %vm349_vm6, %v351_v44, %v347_v58  ;;  %v389_v40 = vadd.f32 %v1453_v43, %v388_v53 }
 0x17d   :  { %v369_v35 = vsel %vm368_vm8, %v1451_v46, %v365_v50  ;;  %v401_v59 = vmul.f32 %v1455_v47, %v352_v38 }
 0x17e   :  { %v374_v39 = vsel %vm371_vm9, %v373_v48, %v369_v35  ;;  %v393_v44 = vsel %vm392_vm12, %v1453_v43, %v389_v40 }
 0x17f   :  { %v400_v49 = vmul.f32 %v374_v39, %v2152_v52  ;;  %v398_v46 = vsel %vm395_vm13, %v397_v54, %v393_v44 }
 0x181   :  { %v2226_v34 = vadd.f32 %v401_v59, %v400_v49 }
 0x183   :  { %1456 = vtanh.f32 %v2226_v34 }
 0x189   :  { %v1457_v45 = vpop.eup %1456 }
 0x18a   :  { %v404_v35 = vmul.f32 %v1457_v45, %v398_v46 }
 0x18c   :  { %423 = vmatmul.f32.vlgmr.msra.gmra.mxu0 %v404_v35  ;;  %443 = vmatmul.f32.vlgmr.msra.gmra.mxu1 %v404_v35 }
 0x18d   :  { %463 = vmatmul.f32.vlgmr.msra.gmra.mxu2 %v404_v35  ;;  %483 = vmatmul.f32.vlgmr.msra.gmra.mxu3 %v404_v35 }
 0x18e   :  { %735 = vmatpush.msra.mxu0 %v1676_v7  ;;  %755 = vmatpush.msra.mxu1 %v1669_v6  ;;  %v3036_v6 = vld [vmem:[#allocation5_spill] sm:$0xff]  ;;  %v3037_v7 = vld [vmem:[#allocation14_spill] sm:$0xff] }
 0x18f   :  { %775 = vmatpush.msra.mxu2 %v1637_v0  ;;  %795 = vmatpush.msra.mxu3 %v1642_v1  ;;  %v3030_v0 = vld [vmem:[#allocation6_spill] sm:$0xff] }
 0x190   :  { %736 = vmatpush.msra.mxu0 %v1698_v11  ;;  %756 = vmatpush.msra.mxu1 %v1681_v8  ;;  %v3031_v1 = vld [vmem:[#allocation2_spill] sm:$0xff]  ;;  %v3038_v8 = vld [vmem:[#allocation13_spill] sm:$0xff] }
 0x191   :  { %776 = vmatpush.msra.mxu2 %v1647_v2  ;;  %796 = vmatpush.msra.mxu3 %v1654_v3  ;;  %v3032_v2 = vld [vmem:[#allocation3_spill] sm:$0xff]  ;;  %v3033_v3 = vld [vmem:[#allocation10_spill] sm:$0xff] }
 0x192   :  { %737 = vmatpush.msra.mxu0 %v1710_v13  ;;  %757 = vmatpush.msra.mxu1 %v1705_v12  ;;  %v3041_v11 = vld [vmem:[#allocation18_spill] sm:$0xff]  ;;  %v3042_v12 = vld [vmem:[#allocation17_spill] sm:$0xff]  ;;  %v3043_v13 = vld [vmem:[#allocation11_spill] sm:$0xff] }
 0x193   :  { %777 = vmatpush.msra.mxu2 %v1659_v4  ;;  %797 = vmatpush.msra.mxu3 %v1664_v5  ;;  %v3034_v4 = vld [vmem:[#allocation9_spill] sm:$0xff]  ;;  %v3035_v5 = vld [vmem:[#allocation4_spill] sm:$0xff] }
 0x194   :  { %738 = vmatpush.msra.mxu0 %v1734_v17  ;;  %758 = vmatpush.msra.mxu1 %v1729_v16  ;;  %v3046_v16 = vld [vmem:[#allocation21_spill] sm:$0xff]  ;;  %v3047_v17 = vld [vmem:[#allocation15_spill] sm:$0xff] }
 0x195   :  { %778 = vmatpush.msra.mxu2 %v1687_v9  ;;  %798 = vmatpush.msra.mxu3 %v1692_v10  ;;  %v3039_v9 = vld [vmem:[#allocation7_spill] sm:$0xff]  ;;  %v3040_v10 = vld [vmem:[#allocation8_spill] sm:$0xff] }
 0x196   :  { %739 = vmatpush.msra.mxu0 %v1758_v21  ;;  %759 = vmatpush.msra.mxu1 %v1753_v20  ;;  %v3050_v20 = vld [vmem:[#allocation25_spill] sm:$0xff]  ;;  %v3051_v21 = vld [vmem:[#allocation19_spill] sm:$0xff] }
 0x197   :  { %779 = vmatpush.msra.mxu2 %v1716_v14  ;;  %799 = vmatpush.msra.mxu3 %v1721_v15  ;;  %v3044_v14 = vld [vmem:[#allocation12_spill] sm:$0xff]  ;;  %v3045_v15 = vld [vmem:[#allocation22_spill] sm:$0xff] }
 0x198   :  { %740 = vmatpush.msra.mxu0 %v1782_v25  ;;  %760 = vmatpush.msra.mxu1 %v1777_v24  ;;  %v3054_v24 = vld [vmem:[#allocation27_spill] sm:$0xff] }
 0x199   :  { %780 = vmatpush.msra.mxu2 %v1740_v18  ;;  %800 = vmatpush.msra.mxu3 %v1745_v19  ;;  %v3048_v18 = vld [vmem:[#allocation16_spill] sm:$0xff]  ;;  %v3049_v19 = vld [vmem:[#allocation26_spill] sm:$0xff]  ;;  %v3055_v25 = vld [vmem:[#allocation23_spill] sm:$0xff] }
 0x19a   :  { %741 = vmatpush.msra.mxu0 %v1806_v29  ;;  %761 = vmatpush.msra.mxu1 %v1801_v28 }
 0x19b   :  { %781 = vmatpush.msra.mxu2 %v1764_v22  ;;  %801 = vmatpush.msra.mxu3 %v1769_v23  ;;  %v3052_v22 = vld [vmem:[#allocation20_spill] sm:$0xff] }
 0x19c   :  { %742 = vmatpush.msra.mxu0 %v1830_v33  ;;  %762 = vmatpush.msra.mxu1 %v1825_v32  ;;  %v3053_v23 = vld [vmem:[#allocation28_spill] sm:$0xff] }
 0x19d   :  { %782 = vmatpush.msra.mxu2 %v1788_v26  ;;  %802 = vmatpush.msra.mxu3 %v1793_v27  ;;  %v3056_v26 = vld [vmem:[#allocation24_spill] sm:$0xff] }
 0x19e   :  { %743 = vmatpush.msra.mxu0 %v1854_v37  ;;  %763 = vmatpush.msra.mxu1 %v1849_v36  ;;  %v1401_v36 = vld [vmem:[%s2866_s0 + $0x10] sm:$0xff] }
 0x19f   :  { %783 = vmatpush.msra.mxu2 %v1812_v30  ;;  %803 = vmatpush.msra.mxu3 %v1817_v31 }
 0x1a0   :  { %744 = vmatpush.msra.mxu0 %v1878_v41  ;;  %764 = vmatpush.msra.mxu1 %v3030_v0 }
 0x1a1   :  { %784 = vmatpush.msra.mxu2 %v3031_v1  ;;  %804 = vmatpush.msra.mxu3 %v3032_v2 }
 0x1a2   :  { %745 = vmatpush.msra.mxu0 %v3033_v3  ;;  %765 = vmatpush.msra.mxu1 %v3034_v4 }
 0x1a3   :  { %785 = vmatpush.msra.mxu2 %v3035_v5  ;;  %805 = vmatpush.msra.mxu3 %v3036_v6 }
 0x1a4   :  { %746 = vmatpush.msra.mxu0 %v3037_v7  ;;  %766 = vmatpush.msra.mxu1 %v3038_v8 }
 0x1a5   :  { %786 = vmatpush.msra.mxu2 %v3039_v9  ;;  %806 = vmatpush.msra.mxu3 %v3040_v10 }
 0x1a6   :  { %747 = vmatpush.msra.mxu0 %v3041_v11  ;;  %767 = vmatpush.msra.mxu1 %v3042_v12 }
 0x1a7   :  { %787 = vmatpush.msra.mxu2 %v3043_v13  ;;  %807 = vmatpush.msra.mxu3 %v3044_v14 }
 0x1a8   :  { %748 = vmatpush.msra.mxu0 %v3045_v15  ;;  %768 = vmatpush.msra.mxu1 %v3046_v16 }
 0x1a9   :  { %788 = vmatpush.msra.mxu2 %v3047_v17  ;;  %808 = vmatpush.msra.mxu3 %v3048_v18 }
 0x1aa   :  { %749 = vmatpush.msra.mxu0 %v3049_v19  ;;  %769 = vmatpush.msra.mxu1 %v3050_v20 }
 0x1ab   :  { %789 = vmatpush.msra.mxu2 %v3051_v21  ;;  %809 = vmatpush.msra.mxu3 %v3052_v22 }
 0x1ac   :  { %750 = vmatpush.msra.mxu0 %v3053_v23  ;;  %770 = vmatpush.msra.mxu1 %v3054_v24  ;;  %v2312_v24 = vld [vmem:[%s2865_s1 + $0x1e8] sm:$0xff] }
 0x1ad   :  { %790 = vmatpush.msra.mxu2 %v3055_v25  ;;  %810 = vmatpush.msra.mxu3 %v3056_v26  ;;  %v2318_v25 = vld [vmem:[%s2865_s1 + $0x1f0] sm:$0xff]  ;;  %v2324_v26 = vld [vmem:[%s2865_s1 + $0x1f8] sm:$0xff] }
 0x209   :  { %v444_v27 = vpop.f32.mrf.mxu1  ;;  %v424_v33 = vpop.f32.mrf.mxu0 }
 0x20a   :  { %v491_v28 = vrot.slane %v444_v27, 6  ;;  %v2330_v27 = vld [vmem:[%s2865_s1 + $0x1c0] sm:$0xff] }
 0x20c   :  { %v494_v37 = vsel %vm163_vm0, %v424_v33, %v491_v28  ;;  %v2336_v28 = vld [vmem:[%s2865_s1 + $0x1c8] sm:$0xff]  ;;  %v2366_v33 = vld [vmem:[%s2865_s1 + $0x1b0] sm:$0xff] }
 0x210   :  { %v464_v29 = vpop.f32.mrf.mxu2  ;;  %v484_v30 = vpop.f32.mrf.mxu3 }
 0x211   :  { %v492_v31 = vrot.slane %v464_v29, 4  ;;  %v493_v32 = vrot.slane %v484_v30, 2  ;;  %v2342_v29 = vld [vmem:[%s2865_s1 + $0x1d0] sm:$0xff]  ;;  %v2348_v30 = vld [vmem:[%s2865_s1 + $0x1d8] sm:$0xff] }
 0x213   :  { %v495_v40 = vsel %vm165_vm1, %v492_v31, %v493_v32  ;;  %v2354_v31 = vld [vmem:[%s2865_s1 + $0x1a0] sm:$0xff]  ;;  %v2360_v32 = vld [vmem:[%s2865_s1 + $0x1a8] sm:$0xff] }
 0x214   :  { %v496_v41 = vsel %vm167_vm2, %v494_v37, %v495_v40  ;;  %v2378_v37 = vld [vmem:[%s2865_s1 + $0x180] sm:$0xff]  ;;  %v2384_v40 = vld [vmem:[%s2865_s1 + $0x188] sm:$0xff] }
 0x215   :  { %v498_v52 = vadd.f32 %v1401_v36, %v496_v41  ;;  %v2372_v36 = vld [vmem:[%s2865_s1 + $0x1b8] sm:$0xff]  ;;  %v2390_v41 = vld [vmem:[%s2865_s1 + $0x190] sm:$0xff] }
 0x217   :  { %v1402_v38 = vmul.f32 -1.442695, %v498_v52  ;;  %v519_v42 = vrot.slane %v498_v52, 2  ;;  %v543_v55 = vrot.slane %v498_v52, 6  ;;  %v540_v53 = vrot.slane %v498_v52, 4  ;;  %v2396_v52 = vld [vmem:[%s2865_s1 + $0x198] sm:$0xff] }
 0x219   :  { %1458 = vpow2.f32 %v1402_v38  ;;  %v1403_v43 = vmul.f32 -1.442695, %v519_v42  ;;  %v1404_v61 = vmul.f32 -1.442695, %v543_v55  ;;  %v2402_v38 = vld [vmem:[%s2865_s1 + $0x160] sm:$0xff]  ;;  %v2408_v42 = vld [vmem:[%s2865_s1 + $0x168] sm:$0xff] }
 0x21a   :  { %v2414_v55 = vld [vmem:[%s2865_s1 + $0x170] sm:$0xff] }
 0x21b   :  { %1460 = vpow2.f32 %v1403_v43  ;;  %v2420_v43 = vld [vmem:[%s2865_s1 + $0x178] sm:$0xff] }
 0x21c   :  { %1462 = vpow2.f32 %v1404_v61  ;;  %v2426_v61 = vld [vmem:[%s2865_s1 + $0x140] sm:$0xff] }
 0x21f   :  { %v1459_v51 = vpop.eup %1458 }
 0x220   :  { %v502_v62 = vadd.f32 1.0, %v1459_v51  ;;  %v2432_v51 = vld [vmem:[%s2865_s1 + $0x148] sm:$0xff] }
 0x221   :  { %v1461_v57 = vpop.eup %1460 }
 0x222   :  { %v1463_v56 = vpop.eup %1462  ;;  %1464 = vrcp.f32 %v502_v62  ;;  %v524_v58 = vadd.f32 1.0, %v1461_v57  ;;  %v514_v60 = vand.u32 2147483648, %v502_v62  ;;  %v512_v45 = vand.u32 2147483647, %v502_v62  ;;  %v2444_v57 = vld [vmem:[%s2865_s1 + $0x158] sm:$0xff] }
 0x223   :  { %v548_v50 = vadd.f32 1.0, %v1463_v56  ;;  %vm508_vm15 = vweird.f32 %v502_v62  ;;  %v2450_v56 = vld [vmem:[%s2865_s1 + $0x120] sm:$0xff] }
 0x224   :  { %1466 = vrcp.f32 %v524_v58  ;;  %v536_v35 = vand.u32 2147483648, %v524_v58  ;;  %v534_v2 = vand.u32 2147483647, %v524_v58  ;;  %v515_v3 = vor.u32 1.1754944e-38, %v514_v60  ;;  %v2510_v60 = vld [vmem:[%s2865_s1 + $0xf0] sm:$0xff] }
 0x225   :  { %1468 = vrcp.f32 %v548_v50  ;;  %vm513_vm5 = vcmp.eq.f32.partialorder %v512_v45, 8.507059e+37  ;;  %vm530_vm6 = vweird.f32 %v524_v58  ;;  %v560_v17 = vand.u32 2147483648, %v548_v50  ;;  %v2528_v45 = vld [vmem:[%s2865_s1 + $0xc8] sm:$0xff] }
 0x226   :  { %1470 = vtanh.f32 %v540_v53  ;;  %v537_v8 = vor.u32 1.1754944e-38, %v536_v35  ;;  %vm535_vm8 = vcmp.eq.f32.partialorder %v534_v2, 8.507059e+37  ;;  %vm554_vm10 = vweird.f32 %v548_v50  ;;  %v2486_v53 = vld [vmem:[%s2865_s1 + $0x110] sm:$0xff]  ;;  %3057 = vst [vmem:[#allocation6_spill] sm:$0xff] %v2528_v45  ;;  %v2540_v35 = vld [vmem:[%s2865_s1 + $0xd8] sm:$0xff] }
 0x227   :  { %v558_v18 = vand.u32 2147483647, %v548_v50  ;;  %v561_v20 = vor.u32 1.1754944e-38, %v560_v17  ;;  %3059 = vst [vmem:[#allocation3_spill] sm:$0xff] %v2540_v35  ;;  %v2558_v2 = vld [vmem:[%s2865_s1 + $0xb0] sm:$0xff]  ;;  %v2642_v17 = vld [vmem:[%s2865_s1 + $0x20] sm:$0xff] }
 0x228   :  { %v1465_v48 = vpop.eup %1464  ;;  %3062 = vst [vmem:[#allocation4_spill] sm:$0xff] %v2558_v2 }
 0x229   :  { %v504_v47 = vmul.f32 %v1465_v48, %v502_v62  ;;  %vm509_vm14 = vweird.f32 %v1465_v48  ;;  %vm559_vm12 = vcmp.eq.f32.partialorder %v558_v18, 8.507059e+37  ;;  %v2438_v62 = vld [vmem:[%s2865_s1 + $0x150] sm:$0xff]  ;;  %3076 = vst [vmem:[#allocation26_spill] sm:$0xff] %v2642_v17  ;;  %v2648_v18 = vld [vmem:[%s2865_s1 + $0x28] sm:$0xff] }
 0x22a   :  { %v1467_v39 = vpop.eup %1466  ;;  %vm510_vm4 = vmor %vm508_vm15, %vm509_vm14  ;;  %3077 = vst [vmem:[#allocation25_spill] sm:$0xff] %v2648_v18 }
 0x22b   :  { %v1469_v49 = vpop.eup %1468  ;;  %v505_v59 = vsub.f32 1.0, %v504_v47  ;;  %v526_v63 = vmul.f32 %v1467_v39, %v524_v58  ;;  %vm531_vm3 = vweird.f32 %v1467_v39  ;;  %v2456_v58 = vld [vmem:[%s2865_s1 + $0x128] sm:$0xff]  ;;  %v2474_v47 = vld [vmem:[%s2865_s1 + $0x100] sm:$0xff] }
 0x22c   :  { %v550_v44 = vmul.f32 %v1469_v49, %v548_v50  ;;  %vm532_vm7 = vmor %vm530_vm6, %vm531_vm3  ;;  %v1471_v10 = vpop.eup %1470  ;;  %vm555_vm9 = vweird.f32 %v1469_v49  ;;  %v2462_v50 = vld [vmem:[%s2865_s1 + $0x130] sm:$0xff] }
 0x22d   :  { %v506_v54 = vmul.f32 %v1465_v48, %v505_v59  ;;  %v527_v46 = vsub.f32 1.0, %v526_v63  ;;  %vm556_vm11 = vmor %vm554_vm10, %vm555_vm9  ;;  %v2498_v59 = vld [vmem:[%s2865_s1 + $0xe0] sm:$0xff]  ;;  %v2504_v63 = vld [vmem:[%s2865_s1 + $0xe8] sm:$0xff] }
 0x22e   :  { %v551_v4 = vsub.f32 1.0, %v550_v44  ;;  %v2516_v44 = vld [vmem:[%s2865_s1 + $0xf8] sm:$0xff] }
 0x22f   :  { %v507_v0 = vadd.f32 %v1465_v48, %v506_v54  ;;  %v528_v1 = vmul.f32 %v1467_v39, %v527_v46  ;;  %v2522_v54 = vld [vmem:[%s2865_s1 + $0xc0] sm:$0xff]  ;;  %v2534_v46 = vld [vmem:[%s2865_s1 + $0xd0] sm:$0xff] }
 0x230   :  { %v552_v12 = vmul.f32 %v1469_v49, %v551_v4  ;;  %3058 = vst [vmem:[#allocation2_spill] sm:$0xff] %v2534_v46  ;;  %v2570_v4 = vld [vmem:[%s2865_s1 + $0x80] sm:$0xff] }
 0x231   :  { %v511_v5 = vsel %vm510_vm4, %v1465_v48, %v507_v0  ;;  %v529_v6 = vadd.f32 %v1467_v39, %v528_v1  ;;  %v2468_v48 = vld [vmem:[%s2865_s1 + $0x138] sm:$0xff]  ;;  %v2546_v0 = vld [vmem:[%s2865_s1 + $0xa0] sm:$0xff]  ;;  %v2552_v1 = vld [vmem:[%s2865_s1 + $0xa8] sm:$0xff]  ;;  %3064 = vst [vmem:[#allocation14_spill] sm:$0xff] %v2570_v4 }
 0x232   :  { %v516_v7 = vsel %vm513_vm5, %v515_v3, %v511_v5  ;;  %v553_v16 = vadd.f32 %v1469_v49, %v552_v12  ;;  %3060 = vst [vmem:[#allocation10_spill] sm:$0xff] %v2546_v0  ;;  %v2564_v3 = vld [vmem:[%s2865_s1 + $0xb8] sm:$0xff]  ;;  %v2576_v5 = vld [vmem:[%s2865_s1 + $0x88] sm:$0xff]  ;;  %v2618_v12 = vld [vmem:[%s2865_s1 + $0x40] sm:$0xff] }
 0x233   :  { %v533_v9 = vsel %vm532_vm7, %v1467_v39, %v529_v6  ;;  %v565_v14 = vmul.f32 %v1471_v10, %v516_v7  ;;  %v2480_v39 = vld [vmem:[%s2865_s1 + $0x108] sm:$0xff]  ;;  %3061 = vst [vmem:[#allocation9_spill] sm:$0xff] %v2552_v1  ;;  %v2582_v6 = vld [vmem:[%s2865_s1 + $0x90] sm:$0xff]  ;;  %v2588_v7 = vld [vmem:[%s2865_s1 + $0x98] sm:$0xff] }
 0x234   :  { %v538_v11 = vsel %vm535_vm8, %v537_v8, %v533_v9  ;;  %v557_v19 = vsel %vm556_vm11, %v1469_v49, %v553_v16  ;;  %v2492_v49 = vld [vmem:[%s2865_s1 + $0x118] sm:$0xff]  ;;  %3063 = vst [vmem:[#allocation5_spill] sm:$0xff] %v2564_v3  ;;  %v2594_v8 = vld [vmem:[%s2865_s1 + $0x60] sm:$0xff]  ;;  %v2600_v9 = vld [vmem:[%s2865_s1 + $0x68] sm:$0xff] }
 0x235   :  { %v564_v13 = vmul.f32 %v538_v11, %v2226_v34  ;;  %v562_v22 = vsel %vm559_vm12, %v561_v20, %v557_v19  ;;  %v2306_v34 = vld [vmem:[%s2865_s1 + $0x1e0] sm:$0xff]  ;;  %3065 = vst [vmem:[#allocation13_spill] sm:$0xff] %v2576_v5  ;;  %v2606_v10 = vld [vmem:[%s2865_s1 + $0x70] sm:$0xff]  ;;  %v2612_v11 = vld [vmem:[%s2865_s1 + $0x78] sm:$0xff] }
 0x236   :  { %3066 = vst [vmem:[#allocation7_spill] sm:$0xff] %v2582_v6  ;;  %v2636_v16 = vld [vmem:[%s2865_s1 + $0x58] sm:$0xff]  ;;  %v2654_v19 = vld [vmem:[%s2865_s1 + $0x30] sm:$0xff] }
 0x237   :  { %v2300_v15 = vadd.f32 %v565_v14, %v564_v13  ;;  %3067 = vst [vmem:[#allocation8_spill] sm:$0xff] %v2588_v7  ;;  %v2624_v13 = vld [vmem:[%s2865_s1 + $0x48] sm:$0xff]  ;;  %v2630_v14 = vld [vmem:[%s2865_s1 + $0x50] sm:$0xff]  ;;  %v2660_v20 = vld [vmem:[%s2865_s1 + $0x38] sm:$0xff] }
 0x238   :  { %3068 = vst [vmem:[#allocation18_spill] sm:$0xff] %v2594_v8 }
 0x239   :  { %1472 = vtanh.f32 %v2300_v15  ;;  %3069 = vst [vmem:[#allocation17_spill] sm:$0xff] %v2600_v9 }
 0x23a   :  { %3070 = vst [vmem:[#allocation11_spill] sm:$0xff] %v2606_v10 }
 0x23b   :  { %3071 = vst [vmem:[#allocation12_spill] sm:$0xff] %v2612_v11 }
 0x23c   :  { %3072 = vst [vmem:[#allocation22_spill] sm:$0xff] %v2618_v12 }
 0x23d   :  { %3073 = vst [vmem:[#allocation21_spill] sm:$0xff] %v2624_v13 }
 0x23e   :  { %3074 = vst [vmem:[#allocation15_spill] sm:$0xff] %v2630_v14 }
 0x23f   :  { %v1473_v21 = vpop.eup %1472  ;;  %3075 = vst [vmem:[#allocation16_spill] sm:$0xff] %v2636_v16 }
 0x240   :  { %v568_v23 = vmul.f32 %v1473_v21, %v562_v22  ;;  %3078 = vst [vmem:[#allocation19_spill] sm:$0xff] %v2654_v19  ;;  %v2666_v21 = vld [vmem:[%s2865_s1] sm:$0xff]  ;;  %v2672_v22 = vld [vmem:[%s2865_s1 + $0x8] sm:$0xff] }
 0x241   :  { %3079 = vst [vmem:[#allocation20_spill] sm:$0xff] %v2660_v20 }
 0x242   :  { %587 = vmatmul.f32.vlgmr.msrb.gmra.mxu0 %v568_v23  ;;  %607 = vmatmul.f32.vlgmr.msrb.gmra.mxu1 %v568_v23  ;;  %3080 = vst [vmem:[#allocation28_spill] sm:$0xff] %v2666_v21 }
 0x243   :  { %627 = vmatmul.f32.vlgmr.msrb.gmra.mxu2 %v568_v23  ;;  %647 = vmatmul.f32.vlgmr.msrb.gmra.mxu3 %v568_v23  ;;  %3081 = vst [vmem:[#allocation27_spill] sm:$0xff] %v2672_v22  ;;  %v2678_v23 = vld [vmem:[%s2865_s1 + $0x10] sm:$0xff] }
 0x244   :  { %899 = vmatpush.msrb.mxu0 %v2306_v34  ;;  %919 = vmatpush.msrb.mxu1 %v2312_v24  ;;  %3082 = vst [vmem:[#allocation23_spill] sm:$0xff] %v2678_v23 }
 0x245   :  { %939 = vmatpush.msrb.mxu2 %v2318_v25  ;;  %959 = vmatpush.msrb.mxu3 %v2324_v26 }
 0x246   :  { %900 = vmatpush.msrb.mxu0 %v2330_v27  ;;  %920 = vmatpush.msrb.mxu1 %v2336_v28 }
 0x247   :  { %940 = vmatpush.msrb.mxu2 %v2342_v29  ;;  %960 = vmatpush.msrb.mxu3 %v2348_v30 }
 0x248   :  { %901 = vmatpush.msrb.mxu0 %v2354_v31  ;;  %921 = vmatpush.msrb.mxu1 %v2360_v32 }
 0x249   :  { %941 = vmatpush.msrb.mxu2 %v2366_v33  ;;  %961 = vmatpush.msrb.mxu3 %v2372_v36 }
 0x24a   :  { %902 = vmatpush.msrb.mxu0 %v2378_v37  ;;  %922 = vmatpush.msrb.mxu1 %v2384_v40 }
 0x24b   :  { %942 = vmatpush.msrb.mxu2 %v2390_v41  ;;  %962 = vmatpush.msrb.mxu3 %v2396_v52 }
 0x24c   :  { %903 = vmatpush.msrb.mxu0 %v2402_v38  ;;  %923 = vmatpush.msrb.mxu1 %v2408_v42 }
 0x24d   :  { %943 = vmatpush.msrb.mxu2 %v2414_v55  ;;  %963 = vmatpush.msrb.mxu3 %v2420_v43 }
 0x24e   :  { %904 = vmatpush.msrb.mxu0 %v2426_v61  ;;  %924 = vmatpush.msrb.mxu1 %v2432_v51 }
 0x24f   :  { %944 = vmatpush.msrb.mxu2 %v2438_v62  ;;  %964 = vmatpush.msrb.mxu3 %v2444_v57 }
 0x250   :  { %905 = vmatpush.msrb.mxu0 %v2450_v56  ;;  %925 = vmatpush.msrb.mxu1 %v2456_v58 }
 0x251   :  { %945 = vmatpush.msrb.mxu2 %v2462_v50  ;;  %965 = vmatpush.msrb.mxu3 %v2468_v48 }
 0x252   :  { %906 = vmatpush.msrb.mxu0 %v2474_v47  ;;  %926 = vmatpush.msrb.mxu1 %v2480_v39 }
 0x253   :  { %946 = vmatpush.msrb.mxu2 %v2486_v53  ;;  %966 = vmatpush.msrb.mxu3 %v2492_v49 }
 0x254   :  { %907 = vmatpush.msrb.mxu0 %v2498_v59  ;;  %927 = vmatpush.msrb.mxu1 %v2504_v63 }
 0x255   :  { %947 = vmatpush.msrb.mxu2 %v2510_v60  ;;  %967 = vmatpush.msrb.mxu3 %v2516_v44 }
 0x256   :  { %908 = vmatpush.msrb.mxu0 %v2522_v54  ;;  %928 = vmatpush.msrb.mxu1 %v2528_v45 }
 0x257   :  { %948 = vmatpush.msrb.mxu2 %v2534_v46  ;;  %968 = vmatpush.msrb.mxu3 %v2540_v35 }
 0x258   :  { %909 = vmatpush.msrb.mxu0 %v2546_v0  ;;  %929 = vmatpush.msrb.mxu1 %v2552_v1 }
 0x259   :  { %949 = vmatpush.msrb.mxu2 %v2558_v2  ;;  %969 = vmatpush.msrb.mxu3 %v2564_v3 }
 0x25a   :  { %910 = vmatpush.msrb.mxu0 %v2570_v4  ;;  %930 = vmatpush.msrb.mxu1 %v2576_v5 }
 0x25b   :  { %950 = vmatpush.msrb.mxu2 %v2582_v6  ;;  %970 = vmatpush.msrb.mxu3 %v2588_v7 }
 0x25c   :  { %911 = vmatpush.msrb.mxu0 %v2594_v8  ;;  %931 = vmatpush.msrb.mxu1 %v2600_v9 }
 0x25d   :  { %951 = vmatpush.msrb.mxu2 %v2606_v10  ;;  %971 = vmatpush.msrb.mxu3 %v2612_v11 }
 0x25e   :  { %912 = vmatpush.msrb.mxu0 %v2618_v12  ;;  %932 = vmatpush.msrb.mxu1 %v2624_v13  ;;  %v1405_v13 = vld [vmem:[%s2866_s0 + $0x18] sm:$0xff] }
 0x25f   :  { %952 = vmatpush.msrb.mxu2 %v2630_v14  ;;  %972 = vmatpush.msrb.mxu3 %v2636_v16 }
 0x260   :  { %913 = vmatpush.msrb.mxu0 %v2642_v17  ;;  %933 = vmatpush.msrb.mxu1 %v2648_v18 }
 0x261   :  { %953 = vmatpush.msrb.mxu2 %v2654_v19  ;;  %973 = vmatpush.msrb.mxu3 %v2660_v20  ;;  %v2684_v20 = vld [vmem:[%s2865_s1 + $0x18] sm:$0xff] }
 0x262   :  { %914 = vmatpush.msrb.mxu0 %v2666_v21  ;;  %934 = vmatpush.msrb.mxu1 %v2672_v22  ;;  %3083 = vst [vmem:[#allocation24_spill] sm:$0xff] %v2684_v20 }
 0x263   :  { %954 = vmatpush.msrb.mxu2 %v2678_v23  ;;  %974 = vmatpush.msrb.mxu3 %v2684_v20 }
 0x2bf   :  { %v608_v21 = vpop.f32.mrf.mxu1  ;;  %v588_v14 = vpop.f32.mrf.mxu0 }
 0x2c0   :  { %v655_v19 = vrot.slane %v608_v21, 6 }
 0x2c2   :  { %v658_v23 = vsel %vm163_vm0, %v588_v14, %v655_v19 }
 0x2c6   :  { %v628_v18 = vpop.f32.mrf.mxu2  ;;  %v648_v17 = vpop.f32.mrf.mxu3 }
 0x2c7   :  { %v656_v16 = vrot.slane %v628_v18, 4  ;;  %v657_v22 = vrot.slane %v648_v17, 2 }
 0x2c9   :  { %v659_v12 = vsel %vm165_vm1, %v656_v16, %v657_v22 }
 0x2ca   :  { %v660_v11 = vsel %vm167_vm2, %v658_v23, %v659_v12 }
 0x2cb   :  { %v662_v10 = vadd.f32 %v1405_v13, %v660_v11 }
 0x2cd   :  { %v1406_v9 = vmul.f32 -1.442695, %v662_v10  ;;  %v683_v20 = vrot.slane %v662_v10, 2  ;;  %v707_v8 = vrot.slane %v662_v10, 6  ;;  %v704_v13 = vrot.slane %v662_v10, 4 }
 0x2cf   :  { %1474 = vpow2.f32 %v1406_v9  ;;  %v1407_v21 = vmul.f32 -1.442695, %v683_v20  ;;  %v1408_v7 = vmul.f32 -1.442695, %v707_v8 }
 0x2d1   :  { %1476 = vpow2.f32 %v1407_v21 }
 0x2d2   :  { %1478 = vpow2.f32 %v1408_v7 }
 0x2d5   :  { %v1475_v17 = vpop.eup %1474 }
 0x2d6   :  { %v666_v18 = vadd.f32 1.0, %v1475_v17 }
 0x2d7   :  { %v1477_v6 = vpop.eup %1476 }
 0x2d8   :  { %v1479_v5 = vpop.eup %1478  ;;  %1480 = vrcp.f32 %v666_v18  ;;  %v688_v4 = vadd.f32 1.0, %v1477_v6  ;;  %v678_v20 = vand.u32 2147483648, %v666_v18  ;;  %v676_v7 = vand.u32 2147483647, %v666_v18 }
 0x2d9   :  { %v712_v14 = vadd.f32 1.0, %v1479_v5  ;;  %vm672_vm14 = vweird.f32 %v666_v18 }
 0x2da   :  { %1482 = vrcp.f32 %v688_v4  ;;  %v700_v17 = vand.u32 2147483648, %v688_v4  ;;  %v698_v3 = vand.u32 2147483647, %v688_v4  ;;  %v679_v2 = vor.u32 1.1754944e-38, %v678_v20 }
 0x2db   :  { %1484 = vrcp.f32 %v712_v14  ;;  %vm677_vm4 = vcmp.eq.f32.partialorder %v676_v7, 8.507059e+37  ;;  %vm694_vm5 = vweird.f32 %v688_v4  ;;  %v724_v20 = vand.u32 2147483648, %v712_v14  ;;  %v3091_v7 = vld [vmem:[#allocation14_spill] sm:$0xff] }
 0x2dc   :  { %1486 = vtanh.f32 %v704_v13  ;;  %vm699_vm7 = vcmp.eq.f32.partialorder %v698_v3, 8.507059e+37  ;;  %vm718_vm9 = vweird.f32 %v712_v14 }
 0x2de   :  { %v1481_v16 = vpop.eup %1480 }
 0x2df   :  { %v668_v12 = vmul.f32 %v1481_v16, %v666_v18  ;;  %vm673_vm13 = vweird.f32 %v1481_v16 }
 0x2e0   :  { %v1483_v11 = vpop.eup %1482  ;;  %vm674_vm3 = vmor %vm672_vm14, %vm673_vm13 }
 0x2e1   :  { %v1485_v19 = vpop.eup %1484  ;;  %v669_v22 = vsub.f32 1.0, %v668_v12  ;;  %v690_v9 = vmul.f32 %v1483_v11, %v688_v4  ;;  %vm695_vm15 = vweird.f32 %v1483_v11  ;;  %v722_v4 = vand.u32 2147483647, %v712_v14 }
 0x2e2   :  { %v714_v8 = vmul.f32 %v1485_v19, %v712_v14  ;;  %vm696_vm6 = vmor %vm694_vm5, %vm695_vm15  ;;  %vm719_vm8 = vweird.f32 %v1485_v19  ;;  %v3088_v14 = vld [vmem:[#allocation9_spill] sm:$0xff] }
 0x2e3   :  { %v670_v23 = vmul.f32 %v1481_v16, %v669_v22  ;;  %v691_v21 = vsub.f32 1.0, %v690_v9  ;;  %v701_v22 = vor.u32 1.1754944e-38, %v700_v17  ;;  %v1487_v9 = vpop.eup %1486  ;;  %vm720_vm10 = vmor %vm718_vm9, %vm719_vm8  ;;  %vm723_vm11 = vcmp.eq.f32.partialorder %v722_v4, 8.507059e+37  ;;  %v3092_v17 = vld [vmem:[#allocation13_spill] sm:$0xff] }
 0x2e4   :  { %v715_v1 = vsub.f32 1.0, %v714_v8  ;;  %v3090_v8 = vld [vmem:[#allocation5_spill] sm:$0xff] }
 0x2e5   :  { %v671_v6 = vadd.f32 %v1481_v16, %v670_v23  ;;  %v692_v5 = vmul.f32 %v1483_v11, %v691_v21  ;;  %v3104_v4 = vld [vmem:[#allocation25_spill] sm:$0xff] }
 0x2e6   :  { %v716_v18 = vmul.f32 %v1485_v19, %v715_v1  ;;  %v3087_v1 = vld [vmem:[#allocation10_spill] sm:$0xff] }
 0x2e7   :  { %v675_v10 = vsel %vm674_vm3, %v1481_v16, %v671_v6  ;;  %v693_v12 = vadd.f32 %v1483_v11, %v692_v5  ;;  %v725_v16 = vor.u32 1.1754944e-38, %v724_v20  ;;  %v3093_v6 = vld [vmem:[#allocation7_spill] sm:$0xff]  ;;  %v3094_v5 = vld [vmem:[#allocation8_spill] sm:$0xff]  ;;  %v3103_v20 = vld [vmem:[#allocation26_spill] sm:$0xff] }
 0x2e8   :  { %v680_v0 = vsel %vm677_vm4, %v679_v2, %v675_v10  ;;  %v717_v45 = vadd.f32 %v1485_v19, %v716_v18  ;;  %v3095_v10 = vld [vmem:[#allocation18_spill] sm:$0xff]  ;;  %v3100_v18 = vld [vmem:[#allocation21_spill] sm:$0xff] }
 0x2e9   :  { %v697_v35 = vsel %vm696_vm6, %v1483_v11, %v693_v12  ;;  %v729_v21 = vmul.f32 %v1487_v9, %v680_v0  ;;  %v3086_v0 = vld [vmem:[#allocation3_spill] sm:$0xff]  ;;  %v3096_v12 = vld [vmem:[#allocation17_spill] sm:$0xff]  ;;  %v3098_v9 = vld [vmem:[#allocation12_spill] sm:$0xff] }
 0x2ea   :  { %v702_v13 = vsel %vm699_vm7, %v701_v22, %v697_v35  ;;  %v721_v2 = vsel %vm720_vm10, %v1485_v19, %v717_v45  ;;  %v3085_v45 = vld [vmem:[#allocation2_spill] sm:$0xff]  ;;  %v3089_v19 = vld [vmem:[#allocation4_spill] sm:$0xff]  ;;  %v3097_v22 = vld [vmem:[#allocation11_spill] sm:$0xff] }
 0x2eb   :  { %v728_v23 = vmul.f32 %v702_v13, %v2300_v15  ;;  %v726_v11 = vsel %vm723_vm11, %v725_v16, %v721_v2  ;;  %v3084_v15 = vld [vmem:[#allocation6_spill] sm:$0xff]  ;;  %v3105_v2 = vld [vmem:[#allocation19_spill] sm:$0xff]  ;;  %v3106_v16 = vld [vmem:[#allocation20_spill] sm:$0xff] }
 0x2ec   :  { %v3099_v13 = vld [vmem:[#allocation22_spill] sm:$0xff] }
 0x2ed   :  { %v2694_v46 = vadd.f32 %v729_v21, %v728_v23  ;;  %v3101_v23 = vld [vmem:[#allocation15_spill] sm:$0xff]  ;;  %v3102_v21 = vld [vmem:[#allocation16_spill] sm:$0xff] }
 0x2ef   :  { %1488 = vtanh.f32 %v2694_v46 }
 0x2f5   :  { %v1489_v3 = vpop.eup %1488 }
 0x2f6   :  { %v732_v35 = vmul.f32 %v1489_v3, %v726_v11  ;;  %v3107_v3 = vld [vmem:[#allocation28_spill] sm:$0xff]  ;;  %v3108_v11 = vld [vmem:[#allocation27_spill] sm:$0xff] }
 0x2f8   :  { %751 = vmatmul.f32.vlgmr.msra.gmra.mxu0 %v732_v35  ;;  %771 = vmatmul.f32.vlgmr.msra.gmra.mxu1 %v732_v35 }
 0x2f9   :  { %791 = vmatmul.f32.vlgmr.msra.gmra.mxu2 %v732_v35  ;;  %811 = vmatmul.f32.vlgmr.msra.gmra.mxu3 %v732_v35  ;;  %v3109_v35 = vld [vmem:[#allocation23_spill] sm:$0xff] }
 0x2fa   :  { %1063 = vmatpush.msra.mxu0 %v2306_v34  ;;  %1083 = vmatpush.msra.mxu1 %v2312_v24 }
 0x2fb   :  { %1103 = vmatpush.msra.mxu2 %v2318_v25  ;;  %1123 = vmatpush.msra.mxu3 %v2324_v26 }
 0x2fc   :  { %1064 = vmatpush.msra.mxu0 %v2330_v27  ;;  %1084 = vmatpush.msra.mxu1 %v2336_v28 }
 0x2fd   :  { %1104 = vmatpush.msra.mxu2 %v2342_v29  ;;  %1124 = vmatpush.msra.mxu3 %v2348_v30 }
 0x2fe   :  { %1065 = vmatpush.msra.mxu0 %v2354_v31  ;;  %1085 = vmatpush.msra.mxu1 %v2360_v32 }
 0x2ff   :  { %1105 = vmatpush.msra.mxu2 %v2366_v33  ;;  %1125 = vmatpush.msra.mxu3 %v2372_v36 }
 0x300   :  { %1066 = vmatpush.msra.mxu0 %v2378_v37  ;;  %1086 = vmatpush.msra.mxu1 %v2384_v40 }
 0x301   :  { %1106 = vmatpush.msra.mxu2 %v2390_v41  ;;  %1126 = vmatpush.msra.mxu3 %v2396_v52 }
 0x302   :  { %1067 = vmatpush.msra.mxu0 %v2402_v38  ;;  %1087 = vmatpush.msra.mxu1 %v2408_v42 }
 0x303   :  { %1107 = vmatpush.msra.mxu2 %v2414_v55  ;;  %1127 = vmatpush.msra.mxu3 %v2420_v43 }
 0x304   :  { %1068 = vmatpush.msra.mxu0 %v2426_v61  ;;  %1088 = vmatpush.msra.mxu1 %v2432_v51 }
 0x305   :  { %1108 = vmatpush.msra.mxu2 %v2438_v62  ;;  %1128 = vmatpush.msra.mxu3 %v2444_v57 }
 0x306   :  { %1069 = vmatpush.msra.mxu0 %v2450_v56  ;;  %1089 = vmatpush.msra.mxu1 %v2456_v58 }
 0x307   :  { %1109 = vmatpush.msra.mxu2 %v2462_v50  ;;  %1129 = vmatpush.msra.mxu3 %v2468_v48 }
 0x308   :  { %1070 = vmatpush.msra.mxu0 %v2474_v47  ;;  %1090 = vmatpush.msra.mxu1 %v2480_v39 }
 0x309   :  { %1110 = vmatpush.msra.mxu2 %v2486_v53  ;;  %1130 = vmatpush.msra.mxu3 %v2492_v49 }
 0x30a   :  { %1071 = vmatpush.msra.mxu0 %v2498_v59  ;;  %1091 = vmatpush.msra.mxu1 %v2504_v63 }
 0x30b   :  { %1111 = vmatpush.msra.mxu2 %v2510_v60  ;;  %1131 = vmatpush.msra.mxu3 %v2516_v44 }
 0x30c   :  { %1072 = vmatpush.msra.mxu0 %v2522_v54  ;;  %1092 = vmatpush.msra.mxu1 %v3084_v15 }
 0x30d   :  { %1112 = vmatpush.msra.mxu2 %v3085_v45  ;;  %1132 = vmatpush.msra.mxu3 %v3086_v0 }
 0x30e   :  { %1073 = vmatpush.msra.mxu0 %v3087_v1  ;;  %1093 = vmatpush.msra.mxu1 %v3088_v14 }
 0x30f   :  { %1113 = vmatpush.msra.mxu2 %v3089_v19  ;;  %1133 = vmatpush.msra.mxu3 %v3090_v8 }
 0x310   :  { %1074 = vmatpush.msra.mxu0 %v3091_v7  ;;  %1094 = vmatpush.msra.mxu1 %v3092_v17 }
 0x311   :  { %1114 = vmatpush.msra.mxu2 %v3093_v6  ;;  %1134 = vmatpush.msra.mxu3 %v3094_v5 }
 0x312   :  { %1075 = vmatpush.msra.mxu0 %v3095_v10  ;;  %1095 = vmatpush.msra.mxu1 %v3096_v12 }
 0x313   :  { %1115 = vmatpush.msra.mxu2 %v3097_v22  ;;  %1135 = vmatpush.msra.mxu3 %v3098_v9 }
 0x314   :  { %1076 = vmatpush.msra.mxu0 %v3099_v13  ;;  %1096 = vmatpush.msra.mxu1 %v3100_v18  ;;  %v3110_v13 = vld [vmem:[#allocation24_spill] sm:$0xff] }
 0x315   :  { %1116 = vmatpush.msra.mxu2 %v3101_v23  ;;  %1136 = vmatpush.msra.mxu3 %v3102_v21 }
 0x316   :  { %1077 = vmatpush.msra.mxu0 %v3103_v20  ;;  %1097 = vmatpush.msra.mxu1 %v3104_v4 }
 0x317   :  { %1117 = vmatpush.msra.mxu2 %v3105_v2  ;;  %1137 = vmatpush.msra.mxu3 %v3106_v16  ;;  %v1409_v2 = vld [vmem:[%s2866_s0 + $0x20] sm:$0xff] }
 0x318   :  { %1078 = vmatpush.msra.mxu0 %v3107_v3  ;;  %1098 = vmatpush.msra.mxu1 %v3108_v11 }
 0x319   :  { %1118 = vmatpush.msra.mxu2 %v3109_v35  ;;  %1138 = vmatpush.msra.mxu3 %v3110_v13 }
 0x375   :  { %v772_v18 = vpop.f32.mrf.mxu1  ;;  %v752_v12 = vpop.f32.mrf.mxu0 }
 0x376   :  { %v819_v23 = vrot.slane %v772_v18, 6 }
 0x378   :  { %v822_v16 = vsel %vm163_vm0, %v752_v12, %v819_v23 }
 0x37c   :  { %v792_v9 = vpop.f32.mrf.mxu2  ;;  %v812_v21 = vpop.f32.mrf.mxu3 }
 0x37d   :  { %v820_v22 = vrot.slane %v792_v9, 4  ;;  %v821_v20 = vrot.slane %v812_v21, 2 }
 0x37f   :  { %v823_v3 = vsel %vm165_vm1, %v820_v22, %v821_v20 }
 0x380   :  { %v824_v11 = vsel %vm167_vm2, %v822_v16, %v823_v3 }
 0x381   :  { %v826_v35 = vadd.f32 %v1409_v2, %v824_v11 }
 0x383   :  { %v1410_v4 = vmul.f32 -1.442695, %v826_v35  ;;  %v847_v13 = vrot.slane %v826_v35, 2  ;;  %v871_v10 = vrot.slane %v826_v35, 6  ;;  %v868_v2 = vrot.slane %v826_v35, 4 }
 0x385   :  { %1490 = vpow2.f32 %v1410_v4  ;;  %v1411_v18 = vmul.f32 -1.442695, %v847_v13  ;;  %v1412_v5 = vmul.f32 -1.442695, %v871_v10 }
 0x387   :  { %1492 = vpow2.f32 %v1411_v18 }
 0x388   :  { %1494 = vpow2.f32 %v1412_v5 }
 0x38b   :  { %v1491_v9 = vpop.eup %1490 }
 0x38c   :  { %v830_v21 = vadd.f32 1.0, %v1491_v9 }
 0x38d   :  { %v1493_v6 = vpop.eup %1492 }
 0x38e   :  { %v1495_v17 = vpop.eup %1494  ;;  %1496 = vrcp.f32 %v830_v21  ;;  %v852_v7 = vadd.f32 1.0, %v1493_v6  ;;  %v842_v13 = vand.u32 2147483648, %v830_v21  ;;  %v840_v5 = vand.u32 2147483647, %v830_v21 }
 0x38f   :  { %v876_v12 = vadd.f32 1.0, %v1495_v17  ;;  %vm836_vm13 = vweird.f32 %v830_v21 }
 0x390   :  { %1498 = vrcp.f32 %v852_v7  ;;  %v864_v9 = vand.u32 2147483648, %v852_v7  ;;  %v862_v8 = vand.u32 2147483647, %v852_v7  ;;  %v843_v19 = vor.u32 1.1754944e-38, %v842_v13 }
 0x391   :  { %1500 = vrcp.f32 %v876_v12  ;;  %vm841_vm3 = vcmp.eq.f32.partialorder %v840_v5, 8.507059e+37  ;;  %vm858_vm4 = vweird.f32 %v852_v7  ;;  %v888_v13 = vand.u32 2147483648, %v876_v12 }
 0x392   :  { %1502 = vtanh.f32 %v868_v2  ;;  %vm863_vm6 = vcmp.eq.f32.partialorder %v862_v8, 8.507059e+37  ;;  %vm882_vm8 = vweird.f32 %v876_v12 }
 0x394   :  { %v1497_v22 = vpop.eup %1496 }
 0x395   :  { %v832_v23 = vmul.f32 %v1497_v22, %v830_v21  ;;  %vm837_vm12 = vweird.f32 %v1497_v22 }
 0x396   :  { %v1499_v20 = vpop.eup %1498  ;;  %vm838_vm15 = vmor %vm836_vm13, %vm837_vm12 }
 0x397   :  { %v1501_v16 = vpop.eup %1500  ;;  %v833_v3 = vsub.f32 1.0, %v832_v23  ;;  %v854_v4 = vmul.f32 %v1499_v20, %v852_v7  ;;  %vm859_vm14 = vweird.f32 %v1499_v20  ;;  %v886_v7 = vand.u32 2147483647, %v876_v12 }
 0x398   :  { %v878_v10 = vmul.f32 %v1501_v16, %v876_v12  ;;  %vm860_vm5 = vmor %vm858_vm4, %vm859_vm14  ;;  %vm883_vm7 = vweird.f32 %v1501_v16 }
 0x399   :  { %v834_v11 = vmul.f32 %v1497_v22, %v833_v3  ;;  %v855_v18 = vsub.f32 1.0, %v854_v4  ;;  %v865_v3 = vor.u32 1.1754944e-38, %v864_v9  ;;  %v1503_v4 = vpop.eup %1502  ;;  %vm884_vm9 = vmor %vm882_vm8, %vm883_vm7  ;;  %vm887_vm10 = vcmp.eq.f32.partialorder %v886_v7, 8.507059e+37 }
 0x39a   :  { %v879_v14 = vsub.f32 1.0, %v878_v10 }
 0x39b   :  { %v835_v6 = vadd.f32 %v1497_v22, %v834_v11  ;;  %v856_v17 = vmul.f32 %v1499_v20, %v855_v18 }
 0x39c   :  { %v880_v21 = vmul.f32 %v1501_v16, %v879_v14 }
 0x39d   :  { %v839_v35 = vsel %vm838_vm15, %v1497_v22, %v835_v6  ;;  %v857_v23 = vadd.f32 %v1499_v20, %v856_v17  ;;  %v889_v22 = vor.u32 1.1754944e-38, %v888_v13 }
 0x39e   :  { %v844_v1 = vsel %vm841_vm3, %v843_v19, %v839_v35  ;;  %v881_v15 = vadd.f32 %v1501_v16, %v880_v21 }
 0x39f   :  { %v861_v0 = vsel %vm860_vm5, %v1499_v20, %v857_v23  ;;  %v893_v18 = vmul.f32 %v1503_v4, %v844_v1 }
 0x3a0   :  { %v866_v2 = vsel %vm863_vm6, %v865_v3, %v861_v0  ;;  %v885_v19 = vsel %vm884_vm9, %v1501_v16, %v881_v15 }
 0x3a1   :  { %v892_v11 = vmul.f32 %v866_v2, %v2694_v46  ;;  %v890_v20 = vsel %vm887_vm10, %v889_v22, %v885_v19 }
 0x3a3   :  { %v2768_v45 = vadd.f32 %v893_v18, %v892_v11 }
 0x3a5   :  { %1504 = vtanh.f32 %v2768_v45 }
 0x3ab   :  { %v1505_v8 = vpop.eup %1504 }
 0x3ac   :  { %v896_v0 = vmul.f32 %v1505_v8, %v890_v20 }
 0x3ae   :  { %915 = vmatmul.f32.vlgmr.msrb.gmra.mxu0 %v896_v0  ;;  %935 = vmatmul.f32.vlgmr.msrb.gmra.mxu1 %v896_v0 }
 0x3af   :  { %955 = vmatmul.f32.vlgmr.msrb.gmra.mxu2 %v896_v0  ;;  %975 = vmatmul.f32.vlgmr.msrb.gmra.mxu3 %v896_v0 }
 0x3b0   :  { %1227 = vmatpush.msrb.mxu0 %v2306_v34  ;;  %1247 = vmatpush.msrb.mxu1 %v2312_v24  ;;  %v3111_v34 = vld [vmem:[#allocation6_spill] sm:$0xff] }
 0x3b1   :  { %1267 = vmatpush.msrb.mxu2 %v2318_v25  ;;  %1287 = vmatpush.msrb.mxu3 %v2324_v26  ;;  %v3112_v24 = vld [vmem:[#allocation2_spill] sm:$0xff]  ;;  %v3113_v25 = vld [vmem:[#allocation3_spill] sm:$0xff] }
 0x3b2   :  { %1228 = vmatpush.msrb.mxu0 %v2330_v27  ;;  %1248 = vmatpush.msrb.mxu1 %v2336_v28  ;;  %v3114_v26 = vld [vmem:[#allocation10_spill] sm:$0xff]  ;;  %v3115_v27 = vld [vmem:[#allocation9_spill] sm:$0xff]  ;;  %v3116_v28 = vld [vmem:[#allocation4_spill] sm:$0xff] }
 0x3b3   :  { %1268 = vmatpush.msrb.mxu2 %v2342_v29  ;;  %1288 = vmatpush.msrb.mxu3 %v2348_v30  ;;  %v3117_v29 = vld [vmem:[#allocation5_spill] sm:$0xff]  ;;  %v3118_v30 = vld [vmem:[#allocation14_spill] sm:$0xff] }
 0x3b4   :  { %1229 = vmatpush.msrb.mxu0 %v2354_v31  ;;  %1249 = vmatpush.msrb.mxu1 %v2360_v32  ;;  %v3119_v31 = vld [vmem:[#allocation13_spill] sm:$0xff]  ;;  %v3120_v32 = vld [vmem:[#allocation7_spill] sm:$0xff] }
 0x3b5   :  { %1269 = vmatpush.msrb.mxu2 %v2366_v33  ;;  %1289 = vmatpush.msrb.mxu3 %v2372_v36  ;;  %v3121_v33 = vld [vmem:[#allocation8_spill] sm:$0xff]  ;;  %v3122_v36 = vld [vmem:[#allocation18_spill] sm:$0xff] }
 0x3b6   :  { %1230 = vmatpush.msrb.mxu0 %v2378_v37  ;;  %1250 = vmatpush.msrb.mxu1 %v2384_v40  ;;  %v3123_v37 = vld [vmem:[#allocation17_spill] sm:$0xff]  ;;  %v3124_v40 = vld [vmem:[#allocation11_spill] sm:$0xff] }
 0x3b7   :  { %1270 = vmatpush.msrb.mxu2 %v2390_v41  ;;  %1290 = vmatpush.msrb.mxu3 %v2396_v52  ;;  %v3125_v41 = vld [vmem:[#allocation12_spill] sm:$0xff]  ;;  %v3126_v52 = vld [vmem:[#allocation22_spill] sm:$0xff] }
 0x3b8   :  { %1231 = vmatpush.msrb.mxu0 %v2402_v38  ;;  %1251 = vmatpush.msrb.mxu1 %v2408_v42  ;;  %v3127_v38 = vld [vmem:[#allocation21_spill] sm:$0xff]  ;;  %v3128_v42 = vld [vmem:[#allocation15_spill] sm:$0xff] }
 0x3b9   :  { %1271 = vmatpush.msrb.mxu2 %v2414_v55  ;;  %1291 = vmatpush.msrb.mxu3 %v2420_v43  ;;  %v3129_v55 = vld [vmem:[#allocation16_spill] sm:$0xff]  ;;  %v3130_v43 = vld [vmem:[#allocation26_spill] sm:$0xff] }
 0x3ba   :  { %1232 = vmatpush.msrb.mxu0 %v2426_v61  ;;  %1252 = vmatpush.msrb.mxu1 %v2432_v51  ;;  %v3131_v61 = vld [vmem:[#allocation25_spill] sm:$0xff]  ;;  %v3132_v51 = vld [vmem:[#allocation19_spill] sm:$0xff] }
 0x3bb   :  { %1272 = vmatpush.msrb.mxu2 %v2438_v62  ;;  %1292 = vmatpush.msrb.mxu3 %v2444_v57  ;;  %v3133_v62 = vld [vmem:[#allocation20_spill] sm:$0xff] }
 0x3bc   :  { %1233 = vmatpush.msrb.mxu0 %v2450_v56  ;;  %1253 = vmatpush.msrb.mxu1 %v2456_v58  ;;  %v3134_v57 = vld [vmem:[#allocation28_spill] sm:$0xff]  ;;  %v3135_v56 = vld [vmem:[#allocation27_spill] sm:$0xff] }
 0x3bd   :  { %1273 = vmatpush.msrb.mxu2 %v2462_v50  ;;  %1293 = vmatpush.msrb.mxu3 %v2468_v48  ;;  %v3136_v58 = vld [vmem:[#allocation23_spill] sm:$0xff]  ;;  %v3137_v50 = vld [vmem:[#allocation24_spill] sm:$0xff] }
 0x3be   :  { %1234 = vmatpush.msrb.mxu0 %v2474_v47  ;;  %1254 = vmatpush.msrb.mxu1 %v2480_v39 }
 0x3bf   :  { %1274 = vmatpush.msrb.mxu2 %v2486_v53  ;;  %1294 = vmatpush.msrb.mxu3 %v2492_v49 }
 0x3c0   :  { %1235 = vmatpush.msrb.mxu0 %v2498_v59  ;;  %1255 = vmatpush.msrb.mxu1 %v2504_v63 }
 0x3c1   :  { %1275 = vmatpush.msrb.mxu2 %v2510_v60  ;;  %1295 = vmatpush.msrb.mxu3 %v2516_v44  ;;  %v1413_v60 = vld [vmem:[%s2866_s0 + $0x28] sm:$0xff] }
 0x3c2   :  { %1236 = vmatpush.msrb.mxu0 %v2522_v54  ;;  %1256 = vmatpush.msrb.mxu1 %v3111_v34 }
 0x3c3   :  { %1276 = vmatpush.msrb.mxu2 %v3112_v24  ;;  %1296 = vmatpush.msrb.mxu3 %v3113_v25 }
 0x3c4   :  { %1237 = vmatpush.msrb.mxu0 %v3114_v26  ;;  %1257 = vmatpush.msrb.mxu1 %v3115_v27 }
 0x3c5   :  { %1277 = vmatpush.msrb.mxu2 %v3116_v28  ;;  %1297 = vmatpush.msrb.mxu3 %v3117_v29 }
 0x3c6   :  { %1238 = vmatpush.msrb.mxu0 %v3118_v30  ;;  %1258 = vmatpush.msrb.mxu1 %v3119_v31 }
 0x3c7   :  { %1278 = vmatpush.msrb.mxu2 %v3120_v32  ;;  %1298 = vmatpush.msrb.mxu3 %v3121_v33 }
 0x3c8   :  { %1239 = vmatpush.msrb.mxu0 %v3122_v36  ;;  %1259 = vmatpush.msrb.mxu1 %v3123_v37 }
 0x3c9   :  { %1279 = vmatpush.msrb.mxu2 %v3124_v40  ;;  %1299 = vmatpush.msrb.mxu3 %v3125_v41 }
 0x3ca   :  { %1240 = vmatpush.msrb.mxu0 %v3126_v52  ;;  %1260 = vmatpush.msrb.mxu1 %v3127_v38 }
 0x3cb   :  { %1280 = vmatpush.msrb.mxu2 %v3128_v42  ;;  %1300 = vmatpush.msrb.mxu3 %v3129_v55 }
 0x3cc   :  { %1241 = vmatpush.msrb.mxu0 %v3130_v43  ;;  %1261 = vmatpush.msrb.mxu1 %v3131_v61 }
 0x3cd   :  { %1281 = vmatpush.msrb.mxu2 %v3132_v51  ;;  %1301 = vmatpush.msrb.mxu3 %v3133_v62 }
 0x3ce   :  { %1242 = vmatpush.msrb.mxu0 %v3134_v57  ;;  %1262 = vmatpush.msrb.mxu1 %v3135_v56 }
 0x3cf   :  { %1282 = vmatpush.msrb.mxu2 %v3136_v58  ;;  %1302 = vmatpush.msrb.mxu3 %v3137_v50 }
 0x42b   :  { %v936_v48 = vpop.f32.mrf.mxu1  ;;  %v916_v63 = vpop.f32.mrf.mxu0 }
 0x42c   :  { %v983_v47 = vrot.slane %v936_v48, 6 }
 0x42e   :  { %v986_v44 = vsel %vm163_vm0, %v916_v63, %v983_v47 }
 0x432   :  { %v956_v39 = vpop.f32.mrf.mxu2  ;;  %v976_v53 = vpop.f32.mrf.mxu3 }
 0x433   :  { %v984_v49 = vrot.slane %v956_v39, 4  ;;  %v985_v59 = vrot.slane %v976_v53, 2  ;;  %v1417_v53 = vld [vmem:[%s2866_s0 + $0x30] sm:$0xff] }
 0x435   :  { %v987_v54 = vsel %vm165_vm1, %v984_v49, %v985_v59 }
 0x436   :  { %v988_v46 = vsel %vm167_vm2, %v986_v44, %v987_v54 }
 0x437   :  { %v990_v15 = vadd.f32 %v1413_v60, %v988_v46 }
 0x439   :  { %v1414_v1 = vmul.f32 -1.442695, %v990_v15  ;;  %v1011_v14 = vrot.slane %v990_v15, 2  ;;  %v1035_v12 = vrot.slane %v990_v15, 6  ;;  %v1032_v21 = vrot.slane %v990_v15, 4 }
 0x43b   :  { %1506 = vpow2.f32 %v1414_v1  ;;  %v1415_v16 = vmul.f32 -1.442695, %v1011_v14  ;;  %v1416_v10 = vmul.f32 -1.442695, %v1035_v12 }
 0x43d   :  { %1508 = vpow2.f32 %v1415_v16 }
 0x43e   :  { %1510 = vpow2.f32 %v1416_v10 }
 0x441   :  { %v1507_v5 = vpop.eup %1506 }
 0x442   :  { %v994_v9 = vadd.f32 1.0, %v1507_v5 }
 0x443   :  { %v1509_v6 = vpop.eup %1508 }
 0x444   :  { %v1511_v17 = vpop.eup %1510  ;;  %1512 = vrcp.f32 %v994_v9  ;;  %v1016_v35 = vadd.f32 1.0, %v1509_v6  ;;  %v1006_v7 = vand.u32 2147483648, %v994_v9  ;;  %v1004_v8 = vand.u32 2147483647, %v994_v9 }
 0x445   :  { %v1040_v23 = vadd.f32 1.0, %v1511_v17  ;;  %vm1000_vm12 = vweird.f32 %v994_v9 }
 0x446   :  { %1514 = vrcp.f32 %v1016_v35  ;;  %v1028_v0 = vand.u32 2147483648, %v1016_v35  ;;  %v1026_v25 = vand.u32 2147483647, %v1016_v35  ;;  %v1007_v26 = vor.u32 1.1754944e-38, %v1006_v7 }
 0x447   :  { %1516 = vrcp.f32 %v1040_v23  ;;  %vm1005_vm15 = vcmp.eq.f32.partialorder %v1004_v8, 8.507059e+37  ;;  %vm1022_vm3 = vweird.f32 %v1016_v35  ;;  %v1052_v42 = vand.u32 2147483648, %v1040_v23 }
 0x448   :  { %1518 = vtanh.f32 %v1032_v21  ;;  %v1029_v31 = vor.u32 1.1754944e-38, %v1028_v0  ;;  %vm1027_vm5 = vcmp.eq.f32.partialorder %v1026_v25, 8.507059e+37  ;;  %vm1046_vm7 = vweird.f32 %v1040_v23 }
 0x449   :  { %v1050_v55 = vand.u32 2147483647, %v1040_v23  ;;  %v1053_v61 = vor.u32 1.1754944e-38, %v1052_v42 }
 0x44a   :  { %v1513_v3 = vpop.eup %1512 }
 0x44b   :  { %v996_v4 = vmul.f32 %v1513_v3, %v994_v9  ;;  %vm1001_vm11 = vweird.f32 %v1513_v3  ;;  %vm1051_vm9 = vcmp.eq.f32.partialorder %v1050_v55, 8.507059e+37 }
 0x44c   :  { %v1515_v2 = vpop.eup %1514  ;;  %vm1002_vm14 = vmor %vm1000_vm12, %vm1001_vm11 }
 0x44d   :  { %v1517_v11 = vpop.eup %1516  ;;  %v997_v18 = vsub.f32 1.0, %v996_v4  ;;  %v1018_v13 = vmul.f32 %v1515_v2, %v1016_v35  ;;  %vm1023_vm13 = vweird.f32 %v1515_v2 }
 0x44e   :  { %v1042_v19 = vmul.f32 %v1517_v11, %v1040_v23  ;;  %vm1024_vm4 = vmor %vm1022_vm3, %vm1023_vm13  ;;  %v1519_v33 = vpop.eup %1518  ;;  %vm1047_vm6 = vweird.f32 %v1517_v11 }
 0x44f   :  { %v998_v22 = vmul.f32 %v1513_v3, %v997_v18  ;;  %v1019_v20 = vsub.f32 1.0, %v1018_v13  ;;  %vm1048_vm8 = vmor %vm1046_vm7, %vm1047_vm6 }
 0x450   :  { %v1043_v27 = vsub.f32 1.0, %v1042_v19 }
 0x451   :  { %v999_v34 = vadd.f32 %v1513_v3, %v998_v22  ;;  %v1020_v24 = vmul.f32 %v1515_v2, %v1019_v20 }
 0x452   :  { %v1044_v37 = vmul.f32 %v1517_v11, %v1043_v27 }
 0x453   :  { %v1003_v28 = vsel %vm1002_vm14, %v1513_v3, %v999_v34  ;;  %v1021_v29 = vadd.f32 %v1515_v2, %v1020_v24 }
 0x454   :  { %v1008_v30 = vsel %vm1005_vm15, %v1007_v26, %v1003_v28  ;;  %v1045_v38 = vadd.f32 %v1517_v11, %v1044_v37 }
 0x455   :  { %v1025_v32 = vsel %vm1024_vm4, %v1515_v2, %v1021_v29  ;;  %v1057_v41 = vmul.f32 %v1519_v33, %v1008_v30 }
 0x456   :  { %v1030_v36 = vsel %vm1027_vm5, %v1029_v31, %v1025_v32  ;;  %v1049_v43 = vsel %vm1048_vm8, %v1517_v11, %v1045_v38 }
 0x457   :  { %v1056_v40 = vmul.f32 %v1030_v36, %v2768_v45  ;;  %v1054_v62 = vsel %vm1051_vm9, %v1053_v61, %v1049_v43 }
 0x459   :  { %v2842_v52 = vadd.f32 %v1057_v41, %v1056_v40 }
 0x45b   :  { %1520 = vtanh.f32 %v2842_v52 }
 0x461   :  { %v1521_v51 = vpop.eup %1520 }
 0x462   :  { %v1060_v57 = vmul.f32 %v1521_v51, %v1054_v62 }
 0x464   :  { %1079 = vmatmul.f32.vlgmr.msra.gmra.mxu0 %v1060_v57  ;;  %1099 = vmatmul.f32.vlgmr.msra.gmra.mxu1 %v1060_v57 }
 0x465   :  { %1119 = vmatmul.f32.vlgmr.msra.gmra.mxu2 %v1060_v57  ;;  %1139 = vmatmul.f32.vlgmr.msra.gmra.mxu3 %v1060_v57 }
 0x4e1   :  { %v1100_v45 = vpop.f32.mrf.mxu1  ;;  %v1080_v39 = vpop.f32.mrf.mxu0 }
 0x4e2   :  { %v1147_v56 = vrot.slane %v1100_v45, 6 }
 0x4e4   :  { %v1150_v49 = vsel %vm163_vm0, %v1080_v39, %v1147_v56 }
 0x4e8   :  { %v1120_v58 = vpop.f32.mrf.mxu2  ;;  %v1140_v50 = vpop.f32.mrf.mxu3 }
 0x4e9   :  { %v1148_v48 = vrot.slane %v1120_v58, 4  ;;  %v1149_v47 = vrot.slane %v1140_v50, 2  ;;  %v1421_v50 = vld [vmem:[%s2866_s0 + $0x38] sm:$0xff] }
 0x4eb   :  { %v1151_v59 = vsel %vm165_vm1, %v1148_v48, %v1149_v47 }
 0x4ec   :  { %v1152_v63 = vsel %vm167_vm2, %v1150_v49, %v1151_v59 }
 0x4ed   :  { %v1154_v60 = vadd.f32 %v1417_v53, %v1152_v63 }
 0x4ef   :  { %v1418_v44 = vmul.f32 -1.442695, %v1154_v60  ;;  %v1175_v54 = vrot.slane %v1154_v60, 2  ;;  %v1199_v46 = vrot.slane %v1154_v60, 6  ;;  %v1196_v23 = vrot.slane %v1154_v60, 4 }
 0x4f1   :  { %1522 = vpow2.f32 %v1418_v44  ;;  %v1419_v15 = vmul.f32 -1.442695, %v1175_v54  ;;  %v1420_v1 = vmul.f32 -1.442695, %v1199_v46 }
 0x4f3   :  { %1524 = vpow2.f32 %v1419_v15 }
 0x4f4   :  { %1526 = vpow2.f32 %v1420_v1 }
 0x4f7   :  { %v1523_v14 = vpop.eup %1522 }
 0x4f8   :  { %v1158_v12 = vadd.f32 1.0, %v1523_v14 }
 0x4f9   :  { %v1525_v16 = vpop.eup %1524 }
 0x4fa   :  { %v1527_v10 = vpop.eup %1526  ;;  %1528 = vrcp.f32 %v1158_v12  ;;  %v1180_v5 = vadd.f32 1.0, %v1525_v16  ;;  %v1170_v21 = vand.u32 2147483648, %v1158_v12  ;;  %v1168_v13 = vand.u32 2147483647, %v1158_v12 }
 0x4fb   :  { %v1204_v9 = vadd.f32 1.0, %v1527_v10  ;;  %vm1164_vm11 = vweird.f32 %v1158_v12 }
 0x4fc   :  { %1530 = vrcp.f32 %v1180_v5  ;;  %v1192_v19 = vand.u32 2147483648, %v1180_v5  ;;  %v1190_v20 = vand.u32 2147483647, %v1180_v5  ;;  %v1171_v0 = vor.u32 1.1754944e-38, %v1170_v21 }
 0x4fd   :  { %1532 = vrcp.f32 %v1204_v9  ;;  %vm1169_vm14 = vcmp.eq.f32.partialorder %v1168_v13, 8.507059e+37  ;;  %vm1186_vm15 = vweird.f32 %v1180_v5  ;;  %v1216_v40 = vand.u32 2147483648, %v1204_v9 }
 0x4fe   :  { %1534 = vtanh.f32 %v1196_v23  ;;  %v1193_v27 = vor.u32 1.1754944e-38, %v1192_v19  ;;  %vm1191_vm4 = vcmp.eq.f32.partialorder %v1190_v20, 8.507059e+37  ;;  %vm1210_vm6 = vweird.f32 %v1204_v9 }
 0x4ff   :  { %v1214_v41 = vand.u32 2147483647, %v1204_v9  ;;  %v1217_v42 = vor.u32 1.1754944e-38, %v1216_v40 }
 0x500   :  { %v1529_v6 = vpop.eup %1528 }
 0x501   :  { %v1160_v17 = vmul.f32 %v1529_v6, %v1158_v12  ;;  %vm1165_vm10 = vweird.f32 %v1529_v6  ;;  %vm1215_vm8 = vcmp.eq.f32.partialorder %v1214_v41, 8.507059e+37 }
 0x502   :  { %v1531_v35 = vpop.eup %1530  ;;  %vm1166_vm13 = vmor %vm1164_vm11, %vm1165_vm10 }
 0x503   :  { %v1533_v3 = vpop.eup %1532  ;;  %v1161_v4 = vsub.f32 1.0, %v1160_v17  ;;  %v1182_v2 = vmul.f32 %v1531_v35, %v1180_v5  ;;  %vm1187_vm12 = vweird.f32 %v1531_v35 }
 0x504   :  { %v1206_v11 = vmul.f32 %v1533_v3, %v1204_v9  ;;  %vm1188_vm3 = vmor %vm1186_vm15, %vm1187_vm12  ;;  %v1535_v29 = vpop.eup %1534  ;;  %vm1211_vm5 = vweird.f32 %v1533_v3 }
 0x505   :  { %v1162_v18 = vmul.f32 %v1529_v6, %v1161_v4  ;;  %v1183_v7 = vsub.f32 1.0, %v1182_v2  ;;  %vm1212_vm7 = vmor %vm1210_vm6, %vm1211_vm5 }
 0x506   :  { %v1207_v34 = vsub.f32 1.0, %v1206_v11 }
 0x507   :  { %v1163_v22 = vadd.f32 %v1529_v6, %v1162_v18  ;;  %v1184_v8 = vmul.f32 %v1531_v35, %v1183_v7 }
 0x508   :  { %v1208_v31 = vmul.f32 %v1533_v3, %v1207_v34 }
 0x509   :  { %v1167_v24 = vsel %vm1166_vm13, %v1529_v6, %v1163_v22  ;;  %v1185_v25 = vadd.f32 %v1531_v35, %v1184_v8 }
 0x50a   :  { %v1172_v26 = vsel %vm1169_vm14, %v1171_v0, %v1167_v24  ;;  %v1209_v37 = vadd.f32 %v1533_v3, %v1208_v31 }
 0x50b   :  { %v1189_v28 = vsel %vm1188_vm3, %v1531_v35, %v1185_v25  ;;  %v1221_v33 = vmul.f32 %v1535_v29, %v1172_v26 }
 0x50c   :  { %v1194_v30 = vsel %vm1191_vm4, %v1193_v27, %v1189_v28  ;;  %v1213_v38 = vsel %vm1212_vm7, %v1533_v3, %v1209_v37 }
 0x50d   :  { %v1220_v32 = vmul.f32 %v1194_v30, %v2842_v52  ;;  %v1218_v43 = vsel %vm1215_vm8, %v1217_v42, %v1213_v38 }
 0x50f   :  { %v2852_v36 = vadd.f32 %v1221_v33, %v1220_v32 }
 0x511   :  { %1536 = vtanh.f32 %v2852_v36 }
 0x517   :  { %v1537_v55 = vpop.eup %1536 }
 0x518   :  { %v1224_v61 = vmul.f32 %v1537_v55, %v1218_v43 }
 0x51a   :  { %1243 = vmatmul.f32.vlgmr.msrb.gmra.mxu0 %v1224_v61  ;;  %1263 = vmatmul.f32.vlgmr.msrb.gmra.mxu1 %v1224_v61 }
 0x51b   :  { %1283 = vmatmul.f32.vlgmr.msrb.gmra.mxu2 %v1224_v61  ;;  %1303 = vmatmul.f32.vlgmr.msrb.gmra.mxu3 %v1224_v61 }
 0x597   :  { %v1264_v52 = vpop.f32.mrf.mxu1  ;;  %v1244_v58 = vpop.f32.mrf.mxu0 }
 0x598   :  { %v1311_v51 = vrot.slane %v1264_v52, 6 }
 0x59a   :  { %v1314_v48 = vsel %vm163_vm0, %v1244_v58, %v1311_v51 }
 0x59e   :  { %v1284_v62 = vpop.f32.mrf.mxu2  ;;  %v1304_v57 = vpop.f32.mrf.mxu3 }
 0x59f   :  { %v1312_v45 = vrot.slane %v1284_v62, 4  ;;  %v1313_v56 = vrot.slane %v1304_v57, 2 }
 0x5a1   :  { %v1315_v47 = vsel %vm165_vm1, %v1312_v45, %v1313_v56 }
 0x5a2   :  { %v1316_v39 = vsel %vm167_vm2, %v1314_v48, %v1315_v47 }
 0x5a3   :  { %v1318_v53 = vadd.f32 %v1421_v50, %v1316_v39 }
 0x5a5   :  { %v1422_v49 = vmul.f32 -1.442695, %v1318_v53  ;;  %v1339_v59 = vrot.slane %v1318_v53, 2  ;;  %v1363_v63 = vrot.slane %v1318_v53, 6  ;;  %v1360_v6 = vrot.slane %v1318_v53, 4 }
 0x5a7   :  { %1538 = vpow2.f32 %v1422_v49  ;;  %v1423_v60 = vmul.f32 -1.442695, %v1339_v59  ;;  %v1424_v44 = vmul.f32 -1.442695, %v1363_v63 }
 0x5a9   :  { %1540 = vpow2.f32 %v1423_v60 }
 0x5aa   :  { %1542 = vpow2.f32 %v1424_v44 }
 0x5ad   :  { %v1539_v54 = vpop.eup %1538 }
 0x5ae   :  { %v1322_v46 = vadd.f32 1.0, %v1539_v54 }
 0x5af   :  { %v1541_v15 = vpop.eup %1540 }
 0x5b0   :  { %v1543_v1 = vpop.eup %1542  ;;  %1544 = vrcp.f32 %v1322_v46  ;;  %v1344_v14 = vadd.f32 1.0, %v1541_v15  ;;  %v1334_v3 = vand.u32 2147483648, %v1322_v46  ;;  %v1332_v2 = vand.u32 2147483647, %v1322_v46 }
 0x5b1   :  { %v1368_v12 = vadd.f32 1.0, %v1543_v1  ;;  %vm1328_vm1 = vweird.f32 %v1322_v46 }
 0x5b2   :  { %1546 = vrcp.f32 %v1344_v14  ;;  %v1356_v18 = vand.u32 2147483648, %v1344_v14  ;;  %v1354_v7 = vand.u32 2147483647, %v1344_v14  ;;  %v1335_v22 = vor.u32 1.1754944e-38, %v1334_v3 }
 0x5b3   :  { %1548 = vrcp.f32 %v1368_v12  ;;  %vm1333_vm10 = vcmp.eq.f32.partialorder %v1332_v2, 8.507059e+37  ;;  %vm1350_vm11 = vweird.f32 %v1344_v14  ;;  %v1380_v32 = vand.u32 2147483648, %v1368_v12 }
 0x5b4   :  { %1550 = vtanh.f32 %v1360_v6  ;;  %v1357_v34 = vor.u32 1.1754944e-38, %v1356_v18  ;;  %vm1355_vm13 = vcmp.eq.f32.partialorder %v1354_v7, 8.507059e+37  ;;  %vm1374_vm15 = vweird.f32 %v1368_v12 }
 0x5b5   :  { %v1378_v33 = vand.u32 2147483647, %v1368_v12  ;;  %v1381_v40 = vor.u32 1.1754944e-38, %v1380_v32 }
 0x5b6   :  { %v1545_v16 = vpop.eup %1544 }
 0x5b7   :  { %v1324_v10 = vmul.f32 %v1545_v16, %v1322_v46  ;;  %vm1329_vm0 = vweird.f32 %v1545_v16  ;;  %vm1379_vm4 = vcmp.eq.f32.partialorder %v1378_v33, 8.507059e+37 }
 0x5b8   :  { %v1547_v5 = vpop.eup %1546  ;;  %vm1330_vm2 = vmor %vm1328_vm1, %vm1329_vm0 }
 0x5b9   :  { %v1325_v9 = vsub.f32 1.0, %v1324_v10  ;;  %v1549_v17 = vpop.eup %1548  ;;  %v1346_v35 = vmul.f32 %v1547_v5, %v1344_v14  ;;  %vm1351_vm9 = vweird.f32 %v1547_v5 }
 0x5ba   :  { %v1370_v4 = vmul.f32 %v1549_v17, %v1368_v12  ;;  %vm1352_vm12 = vmor %vm1350_vm11, %vm1351_vm9  ;;  %v1551_v25 = vpop.eup %1550  ;;  %vm1375_vm14 = vweird.f32 %v1549_v17 }
 0x5bb   :  { %v1326_v23 = vmul.f32 %v1545_v16, %v1325_v9  ;;  %v1347_v21 = vsub.f32 1.0, %v1346_v35  ;;  %vm1376_vm3 = vmor %vm1374_vm15, %vm1375_vm14 }
 0x5bc   :  { %v1371_v8 = vsub.f32 1.0, %v1370_v4 }
 0x5bd   :  { %v1327_v11 = vadd.f32 %v1545_v16, %v1326_v23  ;;  %v1348_v13 = vmul.f32 %v1547_v5, %v1347_v21 }
 0x5be   :  { %v1372_v27 = vmul.f32 %v1549_v17, %v1371_v8 }
 0x5bf   :  { %v1331_v19 = vsel %vm1330_vm2, %v1545_v16, %v1327_v11  ;;  %v1349_v20 = vadd.f32 %v1547_v5, %v1348_v13 }
 0x5c0   :  { %v1336_v0 = vsel %vm1333_vm10, %v1335_v22, %v1331_v19  ;;  %v1373_v31 = vadd.f32 %v1549_v17, %v1372_v27 }
 0x5c1   :  { %v1353_v24 = vsel %vm1352_vm12, %v1547_v5, %v1349_v20  ;;  %v1385_v29 = vmul.f32 %v1551_v25, %v1336_v0 }
 0x5c2   :  { %v1358_v26 = vsel %vm1355_vm13, %v1357_v34, %v1353_v24  ;;  %v1377_v37 = vsel %vm1376_vm3, %v1549_v17, %v1373_v31 }
 0x5c3   :  { %v1384_v28 = vmul.f32 %v1358_v26, %v2852_v36  ;;  %v1382_v38 = vsel %vm1379_vm4, %v1381_v40, %v1377_v37 }
 0x5c5   :  { %v1386_v30 = vadd.f32 %v1385_v29, %v1384_v28 }
 0x5c7   :  { %1552 = vtanh.f32 %v1386_v30 }
 0x5cd   :  { %v1553_v41 = vpop.eup %1552 }
 0x5ce   :  { %v1388_v42 = vmul.f32 %v1553_v41, %v1382_v38 }
 0x5d0   :  { %1389 = vst [vmem:[%s2867_s2] sm:$0x3] %v1388_v42 }

</bundles_post_ra>
